<compile_context>
chip_gen: v5e
topology: v5e:2x2
jax: 0.10.0
libtpu: 0.0.40
codegen_flags: <defaults>
</compile_context>

<pallas_src>
import jax
import jax.numpy as jnp
from jax.experimental import pallas as pl
from jax.experimental.pallas import tpu as pltpu


# ----------------------------------------------------------------------------
# Kernel: one batch-tile of the IDRM_ANN forward pass (matmuls + gates fused).
# ----------------------------------------------------------------------------
def idrm_kernel(x_ref,          # [tile, n_in]        f32
                w0_w_ref,       # [n_in, H]            mxu dtype
                w0_b_ref,       # [1, H]               f32
                u_gzrh_ref,     # [n_in, 4H]  (ug|uz|ur|uh)  mxu dtype
                w_gzr_ref,      # [H, 3H]     (wg|wz|wr)     mxu dtype
                b_gzrh_ref,     # [1, 4H]     (bg|bz|br|bh)  f32
                wh1_ref,        # [H, H]               mxu dtype
                w4_ref,         # [H, n_out]            mxu dtype
                o_ref):         # [tile, n_out]         f32
    H = wh1_ref.shape[0]

    def mm(a, w_ref):
        w = w_ref[...]
        return jnp.dot(a.astype(w.dtype), w, preferred_element_type=jnp.float32)

    x = jnp.abs(x_ref[...]) + 0.1                      # f32 elementwise

    s0 = jnp.tanh(mm(x, w0_w_ref) + w0_b_ref[...])

    b_all = b_gzrh_ref[...]                            # [1, 4H]
    x_proj = mm(x, u_gzrh_ref)                         # [tile, 4H] lane-dense
    s0_proj = mm(s0, w_gzr_ref) + b_all[:, :3 * H]     # [tile, 3H]

    g1 = jnp.tanh(x_proj[:, 0 * H:1 * H] + s0_proj[:, 0 * H:1 * H])
    z1 = jnp.tanh(x_proj[:, 1 * H:2 * H] + s0_proj[:, 1 * H:2 * H])
    r1 = jnp.tanh(x_proj[:, 2 * H:3 * H] + s0_proj[:, 2 * H:3 * H])
    h1 = jnp.tanh(x_proj[:, 3 * H:4 * H] + mm(s0 * r1, wh1_ref)
                  + b_all[:, 3 * H:4 * H])
    s1 = (1.0 - g1) * h1 + z1 * s0

    # TODO(synk): the reference module also computes g2/z2/r2/h2/s2, but the
    # returned y = w4(s1) does not depend on them (dead code) — omitted.
    o_ref[...] = mm(s1, w4_ref).astype(o_ref.dtype)


# ----------------------------------------------------------------------------
# Wrapper
# ----------------------------------------------------------------------------
def idrm_forward(x, p, *, block_n=256, mxu_dtype=jnp.float32):
    N, n_in = x.shape
    H = p["w0_w"].shape[1]
    n_out = p["w4_w"].shape[1]

    # Tiny / ragged batches: the custom-call launch dominates — use plain XLA.
    if N < 64 or N % min(block_n, N) != 0:
        return ref_forward(x, p)

    block_n = min(block_n, N)
    grid = (N // block_n,)

    # Fused, lane-dense parameter layout (weights optionally bf16 for the MXU,
    # biases stay f32 and are added post-matmul).
    w0_w = p["w0_w"].astype(mxu_dtype)
    w0_b = p["w0_b"]
    u_gzrh = jnp.concatenate(
        [p["ug1_w"], p["uz1_w"], p["ur1_w"], p["uh1_w"]], axis=1).astype(mxu_dtype)
    w_gzr = jnp.concatenate(
        [p["wg1_w"], p["wz1_w"], p["wr1_w"]], axis=1).astype(mxu_dtype)
    b_gzrh = jnp.concatenate(
        [p["wg1_b"], p["wz1_b"], p["wr1_b"], p["wh1_b"]], axis=1)
    wh1_w = p["wh1_w"].astype(mxu_dtype)
    w4_w = p["w4_w"].astype(mxu_dtype)

    def wspec(shape):
        # Full-array weight block, same tile for every grid step.
        return pl.BlockSpec(shape, lambda i: (0, 0))

    in_specs = [
        pl.BlockSpec((block_n, n_in), lambda i: (i, 0)),   # x tile
        wspec((n_in, H)), wspec((1, H)),                   # w0 w/b
        wspec((n_in, 4 * H)),                              # fused u-projections
        wspec((H, 3 * H)), wspec((1, 4 * H)),              # fused s0-proj + biases
        wspec((H, H)),                                     # wh1
        wspec((H, n_out)),                                 # w4
    ]
    out_specs = pl.BlockSpec((block_n, n_out), lambda i: (i, 0))

    w_itemsize = jnp.dtype(mxu_dtype).itemsize
    flops = 2 * N * (n_in * H + n_in * 4 * H + H * 3 * H + H * H + H * n_out)
    transcendentals = 5 * N * H
    bytes_accessed = (
        x.size * x.dtype.itemsize
        + (w0_w.size + u_gzrh.size + w_gzr.size + wh1_w.size + w4_w.size) * w_itemsize
        + (w0_b.size + b_gzrh.size) * 4
        + N * n_out * x.dtype.itemsize)
    cost = pl.CostEstimate(flops=flops,
                           transcendentals=transcendentals,
                           bytes_accessed=bytes_accessed)

    return pl.pallas_call(
        idrm_kernel,
        out_shape=jax.ShapeDtypeStruct((N, n_out), x.dtype),
        grid=grid,
        in_specs=in_specs,
        out_specs=out_specs,
        cost_estimate=cost,
        compiler_params=pltpu.CompilerParams(
            dimension_semantics=("parallel",)),
    )(x, w0_w, w0_b, u_gzrh, w_gzr, b_gzrh, wh1_w, w4_w)


# ----------------------------------------------------------------------------
# Deterministic parameter construction (mirrors the torch module's shapes).
# torch stores nn.Linear weights as [out, in]; we store them as [in, out].
# ----------------------------------------------------------------------------
def _xavier_uniform(key, fan_in, fan_out):
    limit = (6.0 / (fan_in + fan_out)) ** 0.5
    return jax.random.uniform(key, (fan_in, fan_out), jnp.float32, -limit, limit)


def init_params(key, n_input, n_hidden, n_output):
    keys = jax.random.split(key, 16)
    p = {}
    # w0: weight explicitly set to ones in the module; bias uses default init.
    p["w0_w"] = jnp.ones((n_input, n_hidden), jnp.float32)
    b0 = 1.0 / (n_input ** 0.5)
    p["w0_b"] = jax.random.uniform(keys[0], (1, n_hidden), jnp.float32, -b0, b0)

    ki = 1
    for name, fan_in in [("ug1_w", n_input), ("wg1_w", n_hidden),
                         ("uz1_w", n_input), ("wz1_w", n_hidden),
                         ("ur1_w", n_input), ("wr1_w", n_hidden),
                         ("uh1_w", n_input), ("wh1_w", n_hidden)]:
        p[name] = _xavier_uniform(keys[ki], fan_in, n_hidden)
        ki += 1
    bh = 1.0 / (n_hidden ** 0.5)
    for name in ["wg1_b", "wz1_b", "wr1_b", "wh1_b"]:
        p[name] = jax.random.uniform(keys[ki], (1, n_hidden), jnp.float32, -bh, bh)
        ki += 1
    p["w4_w"] = _xavier_uniform(keys[ki], n_hidden, n_output)
    return p


def ref_forward(x, p):
    """Pure-JAX reference matching the PyTorch _forward_main semantics."""
    x = jnp.abs(x) + 0.1
    t = jnp.tanh
    s0 = t(x @ p["w0_w"] + p["w0_b"])
    g1 = t(x @ p["ug1_w"] + s0 @ p["wg1_w"] + p["wg1_b"])
    z1 = t(x @ p["uz1_w"] + s0 @ p["wz1_w"] + p["wz1_b"])
    r1 = t(x @ p["ur1_w"] + s0 @ p["wr1_w"] + p["wr1_b"])
    h1 = t(x @ p["uh1_w"] + (s0 * r1) @ p["wh1_w"] + p["wh1_b"])
    s1 = (1.0 - g1) * h1 + z1 * s0
    return s1 @ p["w4_w"]


if __name__ == "__main__":
    n_input, n_hidden, n_output = 4, 32, 2
    N = 512  # batch: 2 grid steps of 256 rows -> exercises tiling + megacore

    key = jax.random.PRNGKey(0)
    kx, kp = jax.random.split(key)
    x = jax.random.normal(kx, (N, n_input), jnp.float32)
    params = init_params(kp, n_input, n_hidden, n_output)

    y_ref = ref_forward(x, params)

    # f32 MXU-operand path: bit-accurate vs. the JAX reference.
    y = jax.block_until_ready(idrm_forward(x, params, block_n=256,
                                           mxu_dtype=jnp.float32))
    assert y.shape == (N, n_output)
    assert jnp.allclose(y, y_ref, atol=1e-5, rtol=1e-5), "f32 mismatch vs reference"

    # bf16 MXU-operand path (v6e/v7x-friendly): gate math stays f32, so only
    # matmul-operand rounding differs — loose tolerance.
    y_bf16 = jax.block_until_ready(idrm_forward(x, params, block_n=256,
                                                mxu_dtype=jnp.bfloat16))
    assert jnp.allclose(y_bf16, y_ref, atol=1e-1, rtol=1e-1), "bf16 mismatch vs reference"

    print("KERNEL_OK")
</pallas_src>

<mosaic_0001>
module attributes {stable_mosaic.version = 11 : i64} {
  func.func @idrm_kernel(%arg0: i32, %arg1: memref<256x4xf32, #tpu.memory_space<vmem>>, %arg2: memref<4x32xf32, #tpu.memory_space<vmem>>, %arg3: memref<1x32xf32, #tpu.memory_space<vmem>>, %arg4: memref<4x128xf32, #tpu.memory_space<vmem>>, %arg5: memref<32x96xf32, #tpu.memory_space<vmem>>, %arg6: memref<1x128xf32, #tpu.memory_space<vmem>>, %arg7: memref<32x32xf32, #tpu.memory_space<vmem>>, %arg8: memref<32x2xf32, #tpu.memory_space<vmem>>, %arg9: memref<256x2xf32, #tpu.memory_space<vmem>>) attributes {dimension_semantics = [#tpu.dimension_semantics<parallel>], iteration_bounds = array<i64: 2>, scalar_prefetch = 0 : i64, scratch_operands = 0 : i64, tpu.core_type = #tpu.core_type<tc>, window_params = [{transform_indices = @transform_0, window_bounds = array<i64: 256, 4>}, {pipeline_mode = #tpu.pipeline_mode<synchronous>, transform_indices = @transform_1, window_bounds = array<i64: 4, 32>}, {pipeline_mode = #tpu.pipeline_mode<synchronous>, transform_indices = @transform_2, window_bounds = array<i64: 1, 32>}, {pipeline_mode = #tpu.pipeline_mode<synchronous>, transform_indices = @transform_3, window_bounds = array<i64: 4, 128>}, {pipeline_mode = #tpu.pipeline_mode<synchronous>, transform_indices = @transform_4, window_bounds = array<i64: 32, 96>}, {pipeline_mode = #tpu.pipeline_mode<synchronous>, transform_indices = @transform_5, window_bounds = array<i64: 1, 128>}, {pipeline_mode = #tpu.pipeline_mode<synchronous>, transform_indices = @transform_6, window_bounds = array<i64: 32, 32>}, {pipeline_mode = #tpu.pipeline_mode<synchronous>, transform_indices = @transform_7, window_bounds = array<i64: 32, 2>}, {transform_indices = @transform_8, window_bounds = array<i64: 256, 2>}]} {
    %c0 = arith.constant 0 : index
    %c0_0 = arith.constant 0 : index
    %0 = vector.load %arg1[%c0, %c0_0] : memref<256x4xf32, #tpu.memory_space<vmem>>, vector<256x4xf32>
    %1 = math.absf %0 : vector<256x4xf32>
    %cst = arith.constant 1.000000e-01 : f32
    %2 = vector.broadcast %cst : f32 to vector<256x4xf32>
    %3 = arith.addf %1, %2 : vector<256x4xf32>
    %c0_1 = arith.constant 0 : index
    %c0_2 = arith.constant 0 : index
    %4 = vector.load %arg2[%c0_1, %c0_2] : memref<4x32xf32, #tpu.memory_space<vmem>>, vector<4x32xf32>
    %cst_3 = arith.constant dense<0.000000e+00> : vector<256x32xf32>
    %5 = tpu.matmul %3, %4, %cst_3 {dimension_numbers = #tpu.dot_dimension_numbers<[1], [0], [0], [1], [0, 0, 1, 1], [], []>} : vector<256x4xf32>, vector<4x32xf32>, vector<256x32xf32> -> vector<256x32xf32>
    %c0_4 = arith.constant 0 : index
    %c0_5 = arith.constant 0 : index
    %6 = vector.load %arg3[%c0_4, %c0_5] : memref<1x32xf32, #tpu.memory_space<vmem>>, vector<1x32xf32>
    %7 = vector.broadcast %6 : vector<1x32xf32> to vector<256x32xf32>
    %8 = arith.addf %5, %7 : vector<256x32xf32>
    %9 = math.tanh %8 : vector<256x32xf32>
    %c0_6 = arith.constant 0 : index
    %c0_7 = arith.constant 0 : index
    %10 = vector.load %arg6[%c0_6, %c0_7] : memref<1x128xf32, #tpu.memory_space<vmem>>, vector<1x128xf32>
    %c0_8 = arith.constant 0 : index
    %c0_9 = arith.constant 0 : index
    %11 = vector.load %arg4[%c0_8, %c0_9] : memref<4x128xf32, #tpu.memory_space<vmem>>, vector<4x128xf32>
    %cst_10 = arith.constant dense<0.000000e+00> : vector<256x128xf32>
    %12 = tpu.matmul %3, %11, %cst_10 {dimension_numbers = #tpu.dot_dimension_numbers<[1], [0], [0], [1], [0, 0, 1, 1], [], []>} : vector<256x4xf32>, vector<4x128xf32>, vector<256x128xf32> -> vector<256x128xf32>
    %c0_11 = arith.constant 0 : index
    %c0_12 = arith.constant 0 : index
    %13 = vector.load %arg5[%c0_11, %c0_12] : memref<32x96xf32, #tpu.memory_space<vmem>>, vector<32x96xf32>
    %cst_13 = arith.constant dense<0.000000e+00> : vector<256x96xf32>
    %14 = tpu.matmul %9, %13, %cst_13 {dimension_numbers = #tpu.dot_dimension_numbers<[1], [0], [0], [1], [0, 0, 1, 1], [], []>} : vector<256x32xf32>, vector<32x96xf32>, vector<256x96xf32> -> vector<256x96xf32>
    %15 = vector.extract_strided_slice %10 {offsets = [0, 0], sizes = [1, 96], strides = [1, 1]} : vector<1x128xf32> to vector<1x96xf32>
    %16 = vector.broadcast %15 : vector<1x96xf32> to vector<256x96xf32>
    %17 = arith.addf %14, %16 : vector<256x96xf32>
    %18 = vector.extract_strided_slice %12 {offsets = [0, 0], sizes = [256, 32], strides = [1, 1]} : vector<256x128xf32> to vector<256x32xf32>
    %19 = vector.extract_strided_slice %17 {offsets = [0, 0], sizes = [256, 32], strides = [1, 1]} : vector<256x96xf32> to vector<256x32xf32>
    %20 = arith.addf %18, %19 : vector<256x32xf32>
    %21 = math.tanh %20 : vector<256x32xf32>
    %22 = vector.extract_strided_slice %12 {offsets = [0, 32], sizes = [256, 32], strides = [1, 1]} : vector<256x128xf32> to vector<256x32xf32>
    %23 = vector.extract_strided_slice %17 {offsets = [0, 32], sizes = [256, 32], strides = [1, 1]} : vector<256x96xf32> to vector<256x32xf32>
    %24 = arith.addf %22, %23 : vector<256x32xf32>
    %25 = math.tanh %24 : vector<256x32xf32>
    %26 = vector.extract_strided_slice %12 {offsets = [0, 64], sizes = [256, 32], strides = [1, 1]} : vector<256x128xf32> to vector<256x32xf32>
    %27 = vector.extract_strided_slice %17 {offsets = [0, 64], sizes = [256, 32], strides = [1, 1]} : vector<256x96xf32> to vector<256x32xf32>
    %28 = arith.addf %26, %27 : vector<256x32xf32>
    %29 = math.tanh %28 : vector<256x32xf32>
    %30 = vector.extract_strided_slice %12 {offsets = [0, 96], sizes = [256, 32], strides = [1, 1]} : vector<256x128xf32> to vector<256x32xf32>
    %31 = arith.mulf %9, %29 : vector<256x32xf32>
    %c0_14 = arith.constant 0 : index
    %c0_15 = arith.constant 0 : index
    %32 = vector.load %arg7[%c0_14, %c0_15] : memref<32x32xf32, #tpu.memory_space<vmem>>, vector<32x32xf32>
    %cst_16 = arith.constant dense<0.000000e+00> : vector<256x32xf32>
    %33 = tpu.matmul %31, %32, %cst_16 {dimension_numbers = #tpu.dot_dimension_numbers<[1], [0], [0], [1], [0, 0, 1, 1], [], []>} : vector<256x32xf32>, vector<32x32xf32>, vector<256x32xf32> -> vector<256x32xf32>
    %34 = arith.addf %30, %33 : vector<256x32xf32>
    %35 = vector.extract_strided_slice %10 {offsets = [0, 96], sizes = [1, 32], strides = [1, 1]} : vector<1x128xf32> to vector<1x32xf32>
    %36 = vector.broadcast %35 : vector<1x32xf32> to vector<256x32xf32>
    %37 = arith.addf %34, %36 : vector<256x32xf32>
    %38 = math.tanh %37 : vector<256x32xf32>
    %cst_17 = arith.constant 1.000000e+00 : f32
    %39 = vector.broadcast %cst_17 : f32 to vector<256x32xf32>
    %40 = arith.subf %39, %21 : vector<256x32xf32>
    %41 = arith.mulf %40, %38 : vector<256x32xf32>
    %42 = arith.mulf %25, %9 : vector<256x32xf32>
    %43 = arith.addf %41, %42 : vector<256x32xf32>
    %c0_18 = arith.constant 0 : index
    %c0_19 = arith.constant 0 : index
    %44 = vector.load %arg8[%c0_18, %c0_19] : memref<32x2xf32, #tpu.memory_space<vmem>>, vector<32x2xf32>
    %cst_20 = arith.constant dense<0.000000e+00> : vector<256x2xf32>
    %45 = tpu.matmul %43, %44, %cst_20 {dimension_numbers = #tpu.dot_dimension_numbers<[1], [0], [0], [1], [0, 0, 1, 1], [], []>} : vector<256x32xf32>, vector<32x2xf32>, vector<256x2xf32> -> vector<256x2xf32>
    %c0_21 = arith.constant 0 : index
    %c0_22 = arith.constant 0 : index
    %46 = vector.load %arg9[%c0_21, %c0_22] : memref<256x2xf32, #tpu.memory_space<vmem>>, vector<256x2xf32>
    tpu.vector_store %arg9[%c0_21, %c0_22], %45 {strides = array<i32>} : memref<256x2xf32, #tpu.memory_space<vmem>>, vector<256x2xf32>,
    return
  }
  func.func @transform_0(%arg0: i32) -> (i32, i32) {
    %c0_i32 = arith.constant 0 : i32
    %c0_i32_0 = arith.constant 0 : i32
    return %arg0, %c0_i32 : i32, i32
  }
  func.func @transform_1(%arg0: i32) -> (i32, i32) {
    %c0_i32 = arith.constant 0 : i32
    %c0_i32_0 = arith.constant 0 : i32
    %c0_i32_1 = arith.constant 0 : i32
    return %c0_i32, %c0_i32_0 : i32, i32
  }
  func.func @transform_2(%arg0: i32) -> (i32, i32) {
    %c0_i32 = arith.constant 0 : i32
    %c0_i32_0 = arith.constant 0 : i32
    %c0_i32_1 = arith.constant 0 : i32
    return %c0_i32, %c0_i32_0 : i32, i32
  }
  func.func @transform_3(%arg0: i32) -> (i32, i32) {
    %c0_i32 = arith.constant 0 : i32
    %c0_i32_0 = arith.constant 0 : i32
    %c0_i32_1 = arith.constant 0 : i32
    return %c0_i32, %c0_i32_0 : i32, i32
  }
  func.func @transform_4(%arg0: i32) -> (i32, i32) {
    %c0_i32 = arith.constant 0 : i32
    %c0_i32_0 = arith.constant 0 : i32
    %c0_i32_1 = arith.constant 0 : i32
    return %c0_i32, %c0_i32_0 : i32, i32
  }
  func.func @transform_5(%arg0: i32) -> (i32, i32) {
    %c0_i32 = arith.constant 0 : i32
    %c0_i32_0 = arith.constant 0 : i32
    %c0_i32_1 = arith.constant 0 : i32
    return %c0_i32, %c0_i32_0 : i32, i32
  }
  func.func @transform_6(%arg0: i32) -> (i32, i32) {
    %c0_i32 = arith.constant 0 : i32
    %c0_i32_0 = arith.constant 0 : i32
    %c0_i32_1 = arith.constant 0 : i32
    return %c0_i32, %c0_i32_0 : i32, i32
  }
  func.func @transform_7(%arg0: i32) -> (i32, i32) {
    %c0_i32 = arith.constant 0 : i32
    %c0_i32_0 = arith.constant 0 : i32
    %c0_i32_1 = arith.constant 0 : i32
    return %c0_i32, %c0_i32_0 : i32, i32
  }
  func.func @transform_8(%arg0: i32) -> (i32, i32) {
    %c0_i32 = arith.constant 0 : i32
    %c0_i32_0 = arith.constant 0 : i32
    return %arg0, %c0_i32 : i32, i32
  }
}

</mosaic_0001>

<bundles_post_ra>
// kernel: tpu_custom_call.1
= control target key start
LH: loop header
LB: loop body
LE: loop exit
PB: predicated region body
PF: predicated region fallthrough
CT: control target
= control target key end

     0   :  { %s2872_s27 = smov 0   ;;  %s4115_s0 = inlined_call_operand.vmem [shape: f32[512,4], index: 0, kind: input, shape index: {}]   ;;  %s4116_s1 = inlined_call_operand.vmem [shape: f32[4,32], index: 1, kind: input, shape index: {}]   ;;  %s4117_s2 = inlined_call_operand.vmem [shape: f32[1,32], index: 2, kind: input, shape index: {}]   ;;  %s4118_s3 = inlined_call_operand.vmem [shape: f32[4,128], index: 3, kind: input, shape index: {}]   ;;  %s4119_s4 = inlined_call_operand.vmem [shape: f32[32,96], index: 4, kind: input, shape index: {}]   ;;  %s4120_s5 = inlined_call_operand.vmem [shape: f32[1,128], index: 5, kind: input, shape index: {}]   ;;  %s4121_s6 = inlined_call_operand.vmem [shape: f32[32,32], index: 6, kind: input, shape index: {}]   ;;  %s4122_s7 = inlined_call_operand.vmem [shape: f32[32,2], index: 7, kind: input, shape index: {}]   ;;  %s4123_s8 = inlined_call_operand.vmem [shape: f32[512,2], index: 8, kind: output, shape index: {}]  }
   0x1 LB: > { %s2434_s28 = sadd.s32 4294967295, %s2822_s27   ;;  %p2438_p0 = scmp.ge.s32.totalorder %s2822_s27, 1  ;;  %s2822_s27 = sphi %s2872_s27, %s18_s27  }
   0x2   : > { %p263_p1 = scmp.lt.s32.totalorder %s2822_s27, 3 }
   0x4   : > { %p264_p2 = pnand %p2438_p0, %p263_p1 }
   0x6   : > { %267 = sbr.rel (%p264_p2) target bundleno = 1432 (0x598), region = 52 }
   0xb   : > { %v405_v0 = vld [vmem:[%s4116_s1] sm:$0xf]  ;;  %vm507_vm0 = vcmask 1043456   ;;  %s2439_s9 = sshll.u32 %s2434_s28, 5  ;;  %vm410_vm1 = vcmask 31744   ;;  %v777_v17 = vld [vmem:[%s4119_s4 + $0x18] sm:$0xff] }
   0xc   : > { %2443 = vmatpush.msk.msra.mxu0 %vm507_vm0, %v405_v0  ;;  %p298_p3 = scmp.lt.s32.totalorder %s2439_s9, 63  ;;  %2607 = vmatpush.msk.msra.mxu1 %vm507_vm0, %v405_v0  ;;  %v657_v22 = vld [vmem:[%s4118_s3] sm:$0xf]  ;;  %v776_v29 = vld [vmem:[%s4119_s4 + $0x10] sm:$0xff]  ;;  %v775_v30 = vld [vmem:[%s4119_s4 + $0x8] sm:$0xff]  ;;  %vm781_vm2 = vcmask 261120  }
   0xd   : > { %2608 = vmatpush.msk.msra.mxu2 %vm507_vm0, %v405_v0  ;;  %2609 = vmatpush.msk.msra.mxu3 %vm507_vm0, %v405_v0  ;;  %v774_v49 = vld [vmem:[%s4119_s4] sm:$0xff]  ;;  %s2824_s29 = smov 64   ;;  %s2825_s30 = smov 32   ;;  %vm2345_vm3 = vcmask 15360  }
   0xe   : > { %s4273_s9 = smov (!%p298_p3, %s2439_s9), 63  ;;  %2476 = vmatpush.msk.msrb.mxu1 %vm507_vm0, %v657_v22  ;;  %s2826_s19 = smov 96  }
   0xf   : > { %s2440_s10 = sshll.u32 %s4273_s9, 3  ;;  %890 = vmatpush.msrb.mxu2 %v777_v17 }
  0x10   : > { %s2895_s13 = scalar_lea.vmem %s4115_s0, %s2440_s10  ;;  %s3912_s14 = scalar_lea.vmem %s4123_s8, %s2440_s10 }
  0x11   : > { %v309_v1 = vld [vmem:[%s2895_s13] sm:$0xff]  ;;  %v310_v3 = vld [vmem:[%s2895_s13 + $0x8] sm:$0xff]  ;;  %v311_v7 = vld [vmem:[%s2895_s13 + $0x10] sm:$0xff]  ;;  %891 = vmatpush.msrb.mxu2 %v776_v29 }
  0x12   : > { %v341_v2 = vand.u32 2147483647, %v309_v1  ;;  %v342_v5 = vand.u32 2147483647, %v310_v3  ;;  %v343_v8 = vand.u32 2147483647, %v311_v7 }
  0x13   : > { %v312_v10 = vld [vmem:[%s2895_s13 + $0x18] sm:$0xff]  ;;  %v313_v13 = vld [vmem:[%s2895_s13 + $0x20] sm:$0xff]  ;;  %v318_v20 = vld [vmem:[%s2895_s13 + $0x48] sm:$0xff]  ;;  %892 = vmatpush.msrb.mxu2 %v775_v30 }
  0x14   : > { %v2899_v4 = vadd.f32 0.1, %v341_v2  ;;  %v2903_v6 = vadd.f32 0.1, %v342_v5  ;;  %v2908_v9 = vadd.f32 0.1, %v343_v8 }
  0x15   : > { %v344_v11 = vand.u32 2147483647, %v312_v10  ;;  %v345_v14 = vand.u32 2147483647, %v313_v13  ;;  %v317_v15 = vld [vmem:[%s2895_s13 + $0x40] sm:$0xff]  ;;  %v326_v21 = vld [vmem:[%s2895_s13 + $0x88] sm:$0xff]  ;;  %893 = vmatpush.msrb.mxu2 %v774_v49 }
  0x16   : > { %2444 = vmatmul.msk.f32.vlgmr.msra.gmra.mxu0 %vm410_vm1, %v2899_v4  ;;  %v325_v16 = vld [vmem:[%s2895_s13 + $0x80] sm:$0xff]  ;;  %v349_v18 = vand.u32 2147483647, %v317_v15  ;;  %v314_v26 = vld [vmem:[%s2895_s13 + $0x28] sm:$0xff]  ;;  %v350_v27 = vand.u32 2147483647, %v318_v20 }
  0x17   : > { %v2913_v12 = vadd.f32 0.1, %v344_v11  ;;  %v357_v19 = vand.u32 2147483647, %v325_v16  ;;  %v2933_v25 = vadd.f32 0.1, %v345_v14 }
  0x18   : > { %v2928_v23 = vadd.f32 0.1, %v349_v18  ;;  %v358_v28 = vand.u32 2147483647, %v326_v21  ;;  %v346_v31 = vand.u32 2147483647, %v314_v26 }
  0x19   : > { %v2930_v24 = vadd.f32 0.1, %v357_v19  ;;  %v2948_v32 = vadd.f32 0.1, %v350_v27  ;;  %v319_v34 = vld [vmem:[%s2895_s13 + $0x50] sm:$0xff]  ;;  %v320_v43 = vld [vmem:[%s2895_s13 + $0x58] sm:$0xff] }
  0x1a   : > { %2452 = vmatmul.msk.f32.vlgmr.msra.gmra.mxu1 %vm410_vm1, %v2928_v23  ;;  %v2950_v33 = vadd.f32 0.1, %v358_v28  ;;  %v327_v35 = vld [vmem:[%s2895_s13 + $0x90] sm:$0xff]  ;;  %v2954_v36 = vadd.f32 0.1, %v346_v31  ;;  %v328_v44 = vld [vmem:[%s2895_s13 + $0x98] sm:$0xff] }
  0x1b   : > { %2460 = vmatmul.msk.f32.vlgmr.msra.gmra.mxu2 %vm410_vm1, %v2930_v24  ;;  %v315_v37 = vld [vmem:[%s2895_s13 + $0x30] sm:$0xff]  ;;  %v351_v38 = vand.u32 2147483647, %v319_v34  ;;  %v359_v39 = vand.u32 2147483647, %v327_v35  ;;  %v316_v46 = vld [vmem:[%s2895_s13 + $0x38] sm:$0xff] }
  0x1c   : > { %v347_v40 = vand.u32 2147483647, %v315_v37  ;;  %v352_v47 = vand.u32 2147483647, %v320_v43  ;;  %v360_v48 = vand.u32 2147483647, %v328_v44 }
  0x1d   : > { %v2963_v41 = vadd.f32 0.1, %v351_v38  ;;  %v2965_v42 = vadd.f32 0.1, %v359_v39  ;;  %v348_v50 = vand.u32 2147483647, %v316_v46 }
  0x1e   : > { %2445 = vmatmul.msk.f32.gmra.mxu0 %vm410_vm1, %v2903_v6  ;;  %v2969_v45 = vadd.f32 0.1, %v347_v40  ;;  %v2981_v51 = vadd.f32 0.1, %v352_v47  ;;  %v2983_v52 = vadd.f32 0.1, %v360_v48 }
  0x1f   : > { %v321_v53 = vld [vmem:[%s2895_s13 + $0x60] sm:$0xff]  ;;  %v380_v55 = vadd.f32 0.1, %v348_v50  ;;  %v322_v60 = vld [vmem:[%s2895_s13 + $0x68] sm:$0xff]  ;;  %v323_v2 = vld [vmem:[%s2895_s13 + $0x70] sm:$0xff] }
  0x20   : > { %v329_v54 = vld [vmem:[%s2895_s13 + $0xa0] sm:$0xff]  ;;  %v353_v56 = vand.u32 2147483647, %v321_v53  ;;  %v330_v61 = vld [vmem:[%s2895_s13 + $0xa8] sm:$0xff]  ;;  %v354_v62 = vand.u32 2147483647, %v322_v60 }
  0x21   : > { %v361_v57 = vand.u32 2147483647, %v329_v54  ;;  %v362_v63 = vand.u32 2147483647, %v330_v61  ;;  %v331_v3 = vld [vmem:[%s2895_s13 + $0xb0] sm:$0xff]  ;;  %v324_v11 = vld [vmem:[%s2895_s13 + $0x78] sm:$0xff] }
  0x22   : > { %2453 = vmatmul.msk.f32.gmra.mxu1 %vm410_vm1, %v2948_v32  ;;  %v2992_v58 = vadd.f32 0.1, %v353_v56  ;;  %v3002_v0 = vadd.f32 0.1, %v354_v62  ;;  %v355_v5 = vand.u32 2147483647, %v323_v2 }
  0x23   : > { %2461 = vmatmul.msk.f32.gmra.mxu2 %vm410_vm1, %v2950_v33  ;;  %v2994_v59 = vadd.f32 0.1, %v361_v57  ;;  %v3004_v1 = vadd.f32 0.1, %v362_v63  ;;  %v363_v7 = vand.u32 2147483647, %v331_v3 }
  0x24   : > { %v3012_v8 = vadd.f32 0.1, %v355_v5  ;;  %v356_v13 = vand.u32 2147483647, %v324_v11  ;;  %v332_v15 = vld [vmem:[%s2895_s13 + $0xb8] sm:$0xff]  ;;  %v333_v26 = vld [vmem:[%s2895_s13 + $0xc0] sm:$0xff] }
  0x25   : > { %v3014_v10 = vadd.f32 0.1, %v363_v7  ;;  %v364_v16 = vand.u32 2147483647, %v332_v15  ;;  %v3041_v18 = vld [vmem:[%s4117_s2] ss:$0 sm:$0xff] }
  0x26   : > { %2446 = vmatmul.msk.f32.gmra.mxu0 %vm410_vm1, %v2908_v9  ;;  %v3021_v14 = vadd.f32 0.1, %v356_v13  ;;  %v365_v29 = vand.u32 2147483647, %v333_v26  ;;  %v334_v35 = vld [vmem:[%s2895_s13 + $0xc8] sm:$0xff]  ;;  %v335_v43 = vld [vmem:[%s2895_s13 + $0xd0] sm:$0xff] }
  0x27   : > { %v3026_v17 = vadd.f32 0.1, %v364_v16  ;;  %v366_v38 = vand.u32 2147483647, %v334_v35  ;;  %v336_v49 = vld [vmem:[%s2895_s13 + $0xd8] sm:$0xff]  ;;  %v337_v57 = vld [vmem:[%s2895_s13 + $0xe0] sm:$0xff] }
  0x28   : > { %v3067_v30 = vadd.f32 0.1, %v365_v29  ;;  %v368_v53 = vand.u32 2147483647, %v336_v49  ;;  %v369_v61 = vand.u32 2147483647, %v337_v57 }
  0x29   : > { %v3079_v39 = vadd.f32 0.1, %v366_v38  ;;  %v338_v3 = vld [vmem:[%s2895_s13 + $0xe8] sm:$0xff] }
  0x2a   : > { %2454 = vmatmul.msk.f32.gmra.mxu1 %vm410_vm1, %v2963_v41  ;;  %2468 = vmatmul.msk.f32.vlgmr.msra.gmra.mxu3 %vm410_vm1, %v3067_v30  ;;  %v3103_v54 = vadd.f32 0.1, %v368_v53  ;;  %v3115_v62 = vadd.f32 0.1, %v369_v61  ;;  %v370_v7 = vand.u32 2147483647, %v338_v3 }
  0x2b   : > { %2462 = vmatmul.msk.f32.gmra.mxu2 %vm410_vm1, %v2965_v42 }
  0x2c   : > { %v3129_v11 = vadd.f32 0.1, %v370_v7 }
  0x2e   : > { %2447 = vmatmul.msk.f32.gmra.mxu0 %vm410_vm1, %v2913_v12 }
  0x32   : > { %2455 = vmatmul.msk.f32.gmra.mxu1 %vm410_vm1, %v2981_v51  ;;  %2469 = vmatmul.msk.f32.gmra.mxu3 %vm410_vm1, %v3079_v39 }
  0x33   : > { %2463 = vmatmul.msk.f32.gmra.mxu2 %vm410_vm1, %v2983_v52 }
  0x36   : > { %2448 = vmatmul.msk.f32.gmra.mxu0 %vm410_vm1, %v2933_v25 }
  0x3a   : > { %2456 = vmatmul.msk.f32.gmra.mxu1 %vm410_vm1, %v2992_v58 }
  0x3b   : > { %2464 = vmatmul.msk.f32.gmra.mxu2 %vm410_vm1, %v2994_v59 }
  0x3e   : > { %2449 = vmatmul.msk.f32.gmra.mxu0 %vm410_vm1, %v2954_v36 }
  0x42   : > { %2457 = vmatmul.msk.f32.gmra.mxu1 %vm410_vm1, %v3002_v0 }
  0x43   : > { %2465 = vmatmul.msk.f32.gmra.mxu2 %vm410_vm1, %v3004_v1 }
  0x46   : > { %2450 = vmatmul.msk.f32.gmra.mxu0 %vm410_vm1, %v2969_v45 }
  0x4a   : > { %2458 = vmatmul.msk.f32.gmra.mxu1 %vm410_vm1, %v3012_v8 }
  0x4b   : > { %2466 = vmatmul.msk.f32.gmra.mxu2 %vm410_vm1, %v3014_v10 }
  0x4e   : > { %2451 = vmatmul.msk.f32.gmra.mxu0 %vm410_vm1, %v380_v55 }
  0x52   : > { %2459 = vmatmul.msk.f32.gmra.mxu1 %vm410_vm1, %v3021_v14 }
  0x53   : > { %2467 = vmatmul.msk.f32.gmra.mxu2 %vm410_vm1, %v3026_v17 }
  0x5a   : > { %2477 = vmatmul.msk.f32.vlgmr.msrb.gmra.mxu1 %vm410_vm1, %v2899_v4 }
  0x62   : > { %2478 = vmatmul.msk.f32.gmra.mxu1 %vm410_vm1, %v2903_v6 }
  0x6a   : > { %2479 = vmatmul.msk.f32.gmra.mxu1 %vm410_vm1, %v2908_v9 }
  0x72   : > { %2480 = vmatmul.msk.f32.gmra.mxu1 %vm410_vm1, %v2913_v12 }
  0x7a   : > { %2481 = vmatmul.msk.f32.gmra.mxu1 %vm410_vm1, %v2933_v25 }
  0x82   : > { %2482 = vmatmul.msk.f32.gmra.mxu1 %vm410_vm1, %v2954_v36 }
  0x8a   : > { %2483 = vmatmul.msk.f32.gmra.mxu1 %vm410_vm1, %v2969_v45  ;;  %v367_v45 = vand.u32 2147483647, %v335_v43 }
  0x8c   : > { %v3091_v47 = vadd.f32 0.1, %v367_v45 }
  0x8e   : > { %2470 = vmatmul.msk.f32.gmra.mxu3 %vm410_vm1, %v3091_v47 }
  0x92   : > { %2484 = vmatmul.msk.f32.gmra.mxu1 %vm410_vm1, %v380_v55 }
  0x93   : > { %v528_v19 = vpop.f32.mrf.mxu0 }
  0x94   : > { %v529_v4 = vadd.f32 %v3041_v18, %v528_v19 }
  0x96   : > { %2623 = vtanh.f32 %v529_v4  ;;  %2471 = vmatmul.msk.f32.gmra.mxu3 %vm410_vm1, %v3103_v54 }
  0x97   : > { %v552_v34 = vpop.f32.mrf.mxu1 }
  0x98   : > { %v553_v63 = vadd.f32 %v3041_v18, %v552_v34 }
  0x9a   : > { %2485 = vmatmul.msk.f32.gmra.mxu1 %vm410_vm1, %v2928_v23 }
  0x9b   : > { %v531_v6 = vpop.f32.mrf.mxu0 }
  0x9c   : > { %v3048_v9 = vpop.eup %2623  ;;  %v532_v12 = vadd.f32 %v3041_v18, %v531_v6 }
  0x9d   : > { %2509 = vmatmul.msk.f32.vlgmr.msrb.gmra.mxu2 %vm781_vm2, %v3048_v9 }
  0x9e   : > { %2625 = vtanh.f32 %v532_v12  ;;  %v3118_v2 = vpop.f32.mrf.mxu2  ;;  %2472 = vmatmul.msk.f32.gmra.mxu3 %vm410_vm1, %v3115_v62 }
  0x9f   : > { %v555_v46 = vpop.f32.mrf.mxu1 }
  0xa0   : > { %v556_v13 = vadd.f32 %v3041_v18, %v555_v46 }
  0xa2   : > { %2486 = vmatmul.msk.f32.gmra.mxu1 %vm410_vm1, %v2948_v32 }
  0xa3   : > { %v534_v20 = vpop.f32.mrf.mxu0 }
  0xa4   : > { %v3055_v21 = vpop.eup %2625  ;;  %v535_v22 = vadd.f32 %v3041_v18, %v534_v20 }
  0xa5   : > { %2510 = vmatmul.msk.f32.gmra.mxu2 %vm781_vm2, %v3055_v21 }
  0xa6   : > { %2627 = vtanh.f32 %v535_v22  ;;  %2473 = vmatmul.msk.f32.gmra.mxu3 %vm410_vm1, %v3129_v11  ;;  %v579_v16 = vpop.f32.mrf.mxu2  ;;  %v340_v22 = vld [vmem:[%s2895_s13 + $0xf8] sm:$0xff] }
  0xa7   : > { %v558_v55 = vpop.f32.mrf.mxu1  ;;  %v580_v57 = vadd.f32 %v3041_v18, %v579_v16 }
  0xa8   : > { %v559_v12 = vadd.f32 %v3041_v18, %v558_v55  ;;  %v577_v55 = vadd.f32 %v3041_v18, %v3118_v2 }
  0xaa   : > { %2487 = vmatmul.msk.f32.gmra.mxu1 %vm410_vm1, %v2963_v41 }
  0xab   : > { %v537_v25 = vpop.f32.mrf.mxu0 }
  0xac   : > { %v3062_v27 = vpop.eup %2627  ;;  %v538_v28 = vadd.f32 %v3041_v18, %v537_v25  ;;  %v372_v25 = vand.u32 2147483647, %v340_v22 }
  0xad   : > { %2511 = vmatmul.msk.f32.gmra.mxu2 %vm781_vm2, %v3062_v27 }
  0xae   : > { %2629 = vtanh.f32 %v538_v28  ;;  %v3153_v28 = vadd.f32 0.1, %v372_v25 }
  0xb2   : > { %2488 = vmatmul.msk.f32.gmra.mxu1 %vm410_vm1, %v2981_v51  ;;  %v561_v51 = vpop.f32.mrf.mxu1 }
  0xb3   : > { %v540_v31 = vpop.f32.mrf.mxu0  ;;  %v562_v29 = vadd.f32 %v3041_v18, %v561_v51 }
  0xb4   : > { %v3074_v36 = vpop.eup %2629  ;;  %v541_v37 = vadd.f32 %v3041_v18, %v540_v31 }
  0xb5   : > { %2512 = vmatmul.msk.f32.gmra.mxu2 %vm781_vm2, %v3074_v36 }
  0xb6   : > { %2631 = vtanh.f32 %v541_v37 }
  0xba   : > { %2489 = vmatmul.msk.f32.gmra.mxu1 %vm410_vm1, %v2992_v58  ;;  %v564_v19 = vpop.f32.mrf.mxu1  ;;  %v339_v58 = vld [vmem:[%s2895_s13 + $0xf0] sm:$0xff] }
  0xbb   : > { %v543_v40 = vpop.f32.mrf.mxu0  ;;  %v371_v4 = vand.u32 2147483647, %v339_v58  ;;  %v565_v35 = vadd.f32 %v3041_v18, %v564_v19 }
  0xbc   : > { %v3086_v23 = vpop.eup %2631  ;;  %v544_v44 = vadd.f32 %v3041_v18, %v543_v40 }
  0xbd   : > { %2513 = vmatmul.msk.f32.gmra.mxu2 %vm781_vm2, %v3086_v23  ;;  %v3141_v6 = vadd.f32 0.1, %v371_v4 }
  0xbe   : > { %2633 = vtanh.f32 %v544_v44 }
  0xbf   : > { %2474 = vmatmul.msk.f32.gmra.mxu3 %vm410_vm1, %v3141_v6 }
  0xc2   : > { %2490 = vmatmul.msk.f32.gmra.mxu1 %vm410_vm1, %v3002_v0  ;;  %v582_v0 = vpop.f32.mrf.mxu2  ;;  %v567_v26 = vpop.f32.mrf.mxu1 }
  0xc3   : > { %v546_v48 = vpop.f32.mrf.mxu0  ;;  %v568_v38 = vadd.f32 %v3041_v18, %v567_v26  ;;  %v583_v51 = vadd.f32 %v3041_v18, %v582_v0 }
  0xc4   : > { %v3098_v32 = vpop.eup %2633  ;;  %v547_v50 = vadd.f32 %v3041_v18, %v546_v48 }
  0xc5   : > { %2514 = vmatmul.msk.f32.gmra.mxu2 %vm781_vm2, %v3098_v32 }
  0xc6   : > { %2635 = vtanh.f32 %v547_v50 }
  0xc7   : > { %2475 = vmatmul.msk.f32.gmra.mxu3 %vm410_vm1, %v3153_v28 }
  0xca   : > { %2491 = vmatmul.msk.f32.gmra.mxu1 %vm410_vm1, %v3012_v8  ;;  %v585_v8 = vpop.f32.mrf.mxu2  ;;  %v570_v34 = vpop.f32.mrf.mxu1 }
  0xcb   : > { %v549_v56 = vpop.f32.mrf.mxu0  ;;  %v571_v44 = vadd.f32 %v3041_v18, %v570_v34  ;;  %v586_v19 = vadd.f32 %v3041_v18, %v585_v8 }
  0xcc   : > { %v3110_v41 = vpop.eup %2635  ;;  %v550_v60 = vadd.f32 %v3041_v18, %v549_v56 }
  0xcd   : > { %2515 = vmatmul.msk.f32.gmra.mxu2 %vm781_vm2, %v3110_v41 }
  0xce   : > { %2637 = vtanh.f32 %v550_v60 }
  0xcf   : > { %2639 = vtanh.f32 %v553_v63 }
  0xd0   : > { %2641 = vtanh.f32 %v556_v13 }
  0xd1   : > { %2643 = vtanh.f32 %v559_v12 }
  0xd2   : > { %2492 = vmatmul.msk.f32.gmra.mxu1 %vm410_vm1, %v3021_v14  ;;  %2645 = vtanh.f32 %v562_v29  ;;  %v588_v14 = vpop.f32.mrf.mxu2  ;;  %v573_v40 = vpop.f32.mrf.mxu1 }
  0xd3   : > { %2647 = vtanh.f32 %v565_v35  ;;  %v589_v25 = vadd.f32 %v3041_v18, %v588_v14 }
  0xd4   : > { %v3125_v5 = vpop.eup %2637  ;;  %2649 = vtanh.f32 %v568_v38 }
  0xd5   : > { %2516 = vmatmul.msk.f32.gmra.mxu2 %vm781_vm2, %v3125_v5  ;;  %v3134_v15 = vpop.eup %2639  ;;  %2651 = vtanh.f32 %v571_v44  ;;  %v600_v44 = vpop.f32.mrf.mxu3 }
  0xd6   : > { %v3146_v20 = vpop.eup %2641 }
  0xd7   : > { %v3158_v31 = vpop.eup %2643 }
  0xd8   : > { %v3165_v37 = vpop.eup %2645 }
  0xd9   : > { %v3172_v43 = vpop.eup %2647 }
  0xda   : > { %2493 = vmatmul.msk.f32.gmra.mxu1 %vm410_vm1, %v2930_v24  ;;  %v3179_v24 = vpop.f32.mrf.mxu1  ;;  %v3181_v45 = vpop.eup %2649 }
  0xdb   : > { %v3183_v46 = vpop.f32.mrf.mxu2  ;;  %v3192_v49 = vpop.eup %2651 }
  0xdc   : > { %v592_v38 = vadd.f32 %v3041_v18, %v3183_v46 }
  0xdd   : > { %2517 = vmatmul.msk.f32.gmra.mxu2 %vm781_vm2, %v3134_v15 }
  0xe2   : > { %2494 = vmatmul.msk.f32.gmra.mxu1 %vm410_vm1, %v2950_v33  ;;  %v574_v33 = vadd.f32 %v3041_v18, %v573_v40  ;;  %v3190_v48 = vpop.f32.mrf.mxu1 }
  0xe3   : > { %v3196_v50 = vpop.f32.mrf.mxu2 }
  0xe4   : > { %2653 = vtanh.f32 %v574_v33 }
  0xe5   : > { %2518 = vmatmul.msk.f32.gmra.mxu2 %vm781_vm2, %v3146_v20  ;;  %2655 = vtanh.f32 %v577_v55 }
  0xe6   : > { %2657 = vtanh.f32 %v580_v57  ;;  %v595_v57 = vadd.f32 %v3041_v18, %v3196_v50 }
  0xea   : > { %2495 = vmatmul.msk.f32.gmra.mxu1 %vm410_vm1, %v2965_v42  ;;  %v3200_v42 = vpop.f32.mrf.mxu1  ;;  %v3202_v53 = vpop.eup %2653 }
  0xeb   : > { %4184 = vst [vmem:[#allocation2_spill] sm:$0xff] %v3200_v42  ;;  %v3217_v60 = vpop.eup %2655 }
  0xec   : > { %v3233_v3 = vpop.eup %2657 }
  0xed   : > { %2519 = vmatmul.msk.f32.gmra.mxu2 %vm781_vm2, %v3158_v31 }
  0xf2   : > { %2496 = vmatmul.msk.f32.gmra.mxu1 %vm410_vm1, %v2983_v52  ;;  %v3210_v52 = vpop.f32.mrf.mxu2  ;;  %v3212_v56 = vpop.f32.mrf.mxu1 }
  0xf3   : > { %4185 = vst [vmem:[#allocation3_spill] sm:$0xff] %v3212_v56 }
  0xf5   : > { %2520 = vmatmul.msk.f32.gmra.mxu2 %vm781_vm2, %v3165_v37 }
  0xfa   : > { %2497 = vmatmul.msk.f32.gmra.mxu1 %vm410_vm1, %v2994_v59  ;;  %v3224_v59 = vld [vmem:[%s4120_s5] ss:$0 sm:$0xff]  ;;  %v3227_v2 = vpop.f32.mrf.mxu1 }
  0xfb   : > { %4186 = vst [vmem:[#allocation4_spill] sm:$0xff] %v3227_v2 }
  0xfd   : > { %2521 = vmatmul.msk.f32.gmra.mxu2 %vm781_vm2, %v3172_v43 }
 0x102   : > { %2498 = vmatmul.msk.f32.gmra.mxu1 %vm410_vm1, %v3004_v1  ;;  %v3238_v16 = vpop.f32.mrf.mxu1 }
 0x103   : > { %4187 = vst [vmem:[#allocation5_spill] sm:$0xff] %v3238_v16 }
 0x105   : > { %2522 = vmatmul.msk.f32.gmra.mxu2 %vm781_vm2, %v3181_v45 }
 0x10a   : > { %2499 = vmatmul.msk.f32.gmra.mxu1 %vm410_vm1, %v3014_v10  ;;  %v3253_v0 = vpop.f32.mrf.mxu1 }
 0x10b   : > { %4188 = vst [vmem:[#allocation6_spill] sm:$0xff] %v3253_v0 }
 0x10d   : > { %2523 = vmatmul.msk.f32.gmra.mxu2 %vm781_vm2, %v3192_v49 }
 0x112   : > { %2500 = vmatmul.msk.f32.gmra.mxu1 %vm410_vm1, %v3026_v17  ;;  %v3268_v35 = vpop.f32.mrf.mxu1 }
 0x113   : > { %4189 = vst [vmem:[#allocation7_spill] sm:$0xff] %v3268_v35 }
 0x115   : > { %2524 = vmatmul.msk.f32.gmra.mxu2 %vm781_vm2, %v3202_v53 }
 0x11a   : > { %2501 = vmatmul.msk.f32.gmra.mxu1 %vm410_vm1, %v3067_v30  ;;  %v3284_v55 = vpop.f32.mrf.mxu1 }
 0x11b   : > { %4190 = vst [vmem:[#allocation8_spill] sm:$0xff] %v3284_v55 }
 0x11d   : > { %2525 = vmatmul.msk.f32.gmra.mxu2 %vm781_vm2, %v3217_v60 }
 0x120   : > { %v895_v61 = vpop.f32.mrf.mxu2 }
 0x121   : > { %v896_v63 = vadd.f32 %v3224_v59, %v895_v61 }
 0x122   : > { %2502 = vmatmul.msk.f32.gmra.mxu1 %vm410_vm1, %v3079_v39 }
 0x123   : > { %v991_v1 = vadd.f32 %v896_v63, %v3179_v24 }
 0x125   : > { %2659 = vtanh.f32 %v991_v1  ;;  %2526 = vmatmul.msk.f32.gmra.mxu2 %vm781_vm2, %v3233_v3  ;;  %v603_v1 = vpop.f32.mrf.mxu3 }
 0x126   : > { %2661 = vtanh.f32 %v583_v51 }
 0x128   : > { %v898_v7 = vpop.f32.mrf.mxu2 }
 0x129   : > { %v899_v13 = vadd.f32 %v3224_v59, %v898_v7  ;;  %v3300_v7 = vpop.f32.mrf.mxu1 }
 0x12a   : > { %2503 = vmatmul.msk.f32.gmra.mxu1 %vm410_vm1, %v3091_v47  ;;  %4191 = vst [vmem:[#allocation9_spill] sm:$0xff] %v3300_v7 }
 0x12b   : > { %v3241_v58 = vpop.eup %2659  ;;  %v992_v4 = vadd.f32 %v899_v13, %v3190_v48  ;;  %v598_v13 = vadd.f32 %v3041_v18, %v3210_v52  ;;  %v601_v52 = vadd.f32 %v3041_v18, %v600_v44 }
 0x12c   : > { %v3246_v10 = vpop.eup %2661  ;;  %1087 = vrot.lane.b32.xlu0 %v3241_v58, %s2824_s29 }
 0x12d   : > { %2663 = vtanh.f32 %v992_v4  ;;  %2527 = vmatmul.msk.f32.gmra.mxu2 %vm781_vm2, %v3246_v10 }
 0x12e   : > { %2665 = vtanh.f32 %v586_v19 }
 0x130   : > { %v901_v12 = vpop.f32.mrf.mxu2 }
 0x131   : > { %v902_v22 = vadd.f32 %v3224_v59, %v901_v12 }
 0x132   : > { %2504 = vmatmul.msk.f32.gmra.mxu1 %vm410_vm1, %v3103_v54 }
 0x133   : > { %v3256_v26 = vpop.eup %2663  ;;  %v993_v17 = vadd.f32 %v902_v22, %v3200_v42 }
 0x134   : > { %v3261_v29 = vpop.eup %2665  ;;  %1089 = vrot.lane.b32.xlu0 %v3256_v26, %s2824_s29 }
 0x135   : > { %2667 = vtanh.f32 %v993_v17  ;;  %2528 = vmatmul.msk.f32.gmra.mxu2 %vm781_vm2, %v3261_v29 }
 0x136   : > { %2669 = vtanh.f32 %v589_v25  ;;  %v3317_v25 = vpop.f32.mrf.mxu1 }
 0x137   : > { %4192 = vst [vmem:[#allocation10_spill] sm:$0xff] %v3317_v25 }
 0x138   : > { %v904_v8 = vpop.f32.mrf.mxu2 }
 0x139   : > { %v905_v34 = vadd.f32 %v3224_v59, %v904_v8  ;;  %v606_v8 = vpop.f32.mrf.mxu3 }
 0x13a   : > { %2505 = vmatmul.msk.f32.gmra.mxu1 %vm410_vm1, %v3115_v62 }
 0x13b   : > { %v3272_v14 = vpop.eup %2667  ;;  %v994_v30 = vadd.f32 %v905_v34, %v3212_v56 }
 0x13c   : > { %v3277_v40 = vpop.eup %2669  ;;  %1091 = vrot.lane.b32.xlu1 %v3272_v14, %s2824_s29 }
 0x13d   : > { %2671 = vtanh.f32 %v994_v30  ;;  %2529 = vmatmul.msk.f32.gmra.mxu2 %vm781_vm2, %v3277_v40  ;;  %v604_v30 = vadd.f32 %v3041_v18, %v603_v1 }
 0x13e   : > { %2673 = vtanh.f32 %v592_v38 }
 0x140   : > { %v907_v33 = vpop.f32.mrf.mxu2 }
 0x141   : > { %v908_v46 = vadd.f32 %v3224_v59, %v907_v33  ;;  %v3332_v33 = vpop.f32.mrf.mxu1 }
 0x142   : > { %4193 = vst [vmem:[#allocation11_spill] sm:$0xff] %v3332_v33  ;;  %2506 = vmatmul.msk.f32.gmra.mxu1 %vm410_vm1, %v3129_v11 }
 0x143   : > { %v3288_v39 = vpop.eup %2671  ;;  %v995_v61 = vadd.f32 %v908_v46, %v3227_v2 }
 0x144   : > { %v3293_v63 = vpop.eup %2673  ;;  %1093 = vrot.lane.b32.xlu1 %v3288_v39, %s2824_s29 }
 0x145   : > { %2675 = vtanh.f32 %v995_v61  ;;  %2530 = vmatmul.msk.f32.gmra.mxu2 %vm781_vm2, %v3293_v63  ;;  %v609_v61 = vpop.f32.mrf.mxu3 }
 0x146   : > { %2677 = vtanh.f32 %v595_v57 }
 0x148   : > { %v910_v51 = vpop.f32.mrf.mxu2 }
 0x149   : > { %v911_v50 = vadd.f32 %v3224_v59, %v910_v51 }
 0x14a   : > { %2507 = vmatmul.msk.f32.gmra.mxu1 %vm410_vm1, %v3141_v6 }
 0x14b   : > { %v3304_v47 = vpop.eup %2675  ;;  %v996_v19 = vadd.f32 %v911_v50, %v3238_v16  ;;  %v607_v50 = vadd.f32 %v3041_v18, %v606_v8 }
 0x14c   : > { %v3309_v4 = vpop.eup %2677  ;;  %1095 = vrot.lane.b32.xlu2 %v3304_v47, %s2824_s29 }
 0x14d   : > { %2679 = vtanh.f32 %v996_v19  ;;  %2531 = vmatmul.msk.f32.gmra.mxu2 %vm781_vm2, %v3309_v4 }
 0x14e   : > { %2681 = vtanh.f32 %v598_v13  ;;  %v3347_v13 = vpop.f32.mrf.mxu1 }
 0x14f   : > { %2683 = vtanh.f32 %v601_v52  ;;  %4194 = vst [vmem:[#allocation12_spill] sm:$0xff] %v3347_v13  ;;  %v612_v52 = vpop.f32.mrf.mxu3 }
 0x150   : > { %v913_v12 = vpop.f32.mrf.mxu2 }
 0x151   : > { %v914_v22 = vadd.f32 %v3224_v59, %v913_v12 }
 0x152   : > { %2508 = vmatmul.msk.f32.gmra.mxu1 %vm410_vm1, %v3153_v28 }
 0x153   : > { %v3319_v17 = vpop.eup %2679  ;;  %v997_v54 = vadd.f32 %v914_v22, %v3253_v0 }
 0x154   : > { %v3324_v34 = vpop.eup %2681  ;;  %1097 = vrot.lane.b32.xlu2 %v3319_v17, %s2824_s29 }
 0x155   : > { %2685 = vtanh.f32 %v997_v54  ;;  %2532 = vmatmul.msk.f32.gmra.mxu2 %vm781_vm2, %v3324_v34  ;;  %v3334_v46 = vpop.eup %2683  ;;  %v610_v54 = vadd.f32 %v3041_v18, %v609_v61  ;;  %v613_v61 = vadd.f32 %v3041_v18, %v612_v52 }
 0x156   : > { %2687 = vtanh.f32 %v604_v30 }
 0x158   : > { %v916_v38 = vpop.f32.mrf.mxu2 }
 0x159   : > { %v917_v44 = vadd.f32 %v3224_v59, %v916_v38  ;;  %v3362_v38 = vpop.f32.mrf.mxu1 }
 0x15a   : > { %4195 = vst [vmem:[#allocation13_spill] sm:$0xff] %v3362_v38 }
 0x15b   : > { %v3336_v62 = vpop.eup %2685  ;;  %v998_v57 = vadd.f32 %v917_v44, %v3268_v35 }
 0x15c   : > { %1099 = vrot.lane.b32.xlu0 %v3336_v62, %s2824_s29  ;;  %v3349_v19 = vpop.eup %2687 }
 0x15d   : > { %2689 = vtanh.f32 %v998_v57  ;;  %2533 = vmatmul.msk.f32.gmra.mxu2 %vm781_vm2, %v3334_v46 }
 0x15e   : > { %2691 = vtanh.f32 %v607_v50  ;;  %v615_v50 = vpop.f32.mrf.mxu3 }
 0x160   : > { %v919_v51 = vpop.f32.mrf.mxu2 }
 0x161   : > { %v920_v1 = vadd.f32 %v3224_v59, %v919_v51 }
 0x163   : > { %v3351_v12 = vpop.eup %2689  ;;  %v999_v11 = vadd.f32 %v920_v1, %v3284_v55  ;;  %v3377_v1 = vpop.f32.mrf.mxu1 }
 0x164   : > { %1101 = vrot.lane.b32.xlu1 %v3351_v12, %s2824_s29  ;;  %v3364_v30 = vpop.eup %2691  ;;  %4196 = vst [vmem:[#allocation14_spill] sm:$0xff] %v3377_v1 }
 0x165   : > { %2693 = vtanh.f32 %v999_v11  ;;  %2534 = vmatmul.msk.f32.gmra.mxu2 %vm781_vm2, %v3349_v19 }
 0x166   : > { %2695 = vtanh.f32 %v610_v54  ;;  %v616_v54 = vadd.f32 %v3041_v18, %v615_v50  ;;  %v1217_v50 = vld [vmem:[%s4121_s6 + $0x10] sm:$0xff] }
 0x168   : > { %v922_v22 = vpop.f32.mrf.mxu2 }
 0x169   : > { %v923_v8 = vadd.f32 %v3224_v59, %v922_v22 }
 0x16b   : > { %v3366_v44 = vpop.eup %2693  ;;  %v1000_v6 = vadd.f32 %v923_v8, %v3300_v7 }
 0x16c   : > { %1103 = vrot.lane.b32.xlu2 %v3366_v44, %s2824_s29  ;;  %v3379_v11 = vpop.eup %2695 }
 0x16d   : > { %2697 = vtanh.f32 %v1000_v6  ;;  %2535 = vmatmul.msk.f32.gmra.mxu2 %vm781_vm2, %v3364_v30  ;;  %v3392_v6 = vpop.f32.mrf.mxu1 }
 0x16e   : > { %2699 = vtanh.f32 %v613_v61  ;;  %v1218_v61 = vld [vmem:[%s4121_s6 + $0x18] sm:$0xff] }
 0x16f   : > { %1327 = vmatpush.msrb.mxu3 %v1218_v61  ;;  %v1215_v61 = vld [vmem:[%s4121_s6] sm:$0xff] }
 0x170   : > { %v925_v57 = vpop.f32.mrf.mxu2 }
 0x171   : > { %v926_v51 = vadd.f32 %v3224_v59, %v925_v57  ;;  %1328 = vmatpush.msrb.mxu3 %v1217_v50 }
 0x173   : > { %v3381_v22 = vpop.eup %2697  ;;  %v1001_v28 = vadd.f32 %v926_v51, %v3317_v25  ;;  %v618_v25 = vpop.f32.mrf.mxu3 }
 0x174   : > { %4197 = vst [vmem:[#allocation15_spill] sm:$0xff] %v3381_v22  ;;  %1844 = vrot.lane.b32.xlu2 %v3048_v9, %s2825_s30  ;;  %1105 = vrot.lane.b32.xlu0 %v3381_v22, %s2824_s29  ;;  %v3394_v57 = vpop.eup %2699 }
 0x175   : > { %2701 = vtanh.f32 %v1001_v28  ;;  %2536 = vmatmul.msk.f32.gmra.mxu2 %vm781_vm2, %v3379_v11 }
 0x176   : > { %2703 = vtanh.f32 %v616_v54 }
 0x178   : > { %v928_v52 = vpop.f32.mrf.mxu2 }
 0x179   : > { %v929_v8 = vadd.f32 %v3224_v59, %v928_v52  ;;  %v1216_v52 = vld [vmem:[%s4121_s6 + $0x8] sm:$0xff] }
 0x17a   : > { %1329 = vmatpush.msrb.mxu3 %v1216_v52 }
 0x17b   : > { %v3399_v51 = vpop.eup %2701  ;;  %v1002_v28 = vadd.f32 %v929_v8, %v3332_v33  ;;  %v619_v8 = vadd.f32 %v3041_v18, %v618_v25  ;;  %v621_v25 = vpop.f32.mrf.mxu3 }
 0x17c   : > { %4198 = vst [vmem:[#allocation16_spill] sm:$0xff] %v3399_v51  ;;  %1846 = vrot.lane.b32.xlu2 %v3055_v21, %s2825_s30  ;;  %1107 = vrot.lane.b32.xlu1 %v3399_v51, %s2824_s29  ;;  %v3421_v7 = vpop.eup %2703 }
 0x17d   : > { %2705 = vtanh.f32 %v1002_v28  ;;  %2537 = vmatmul.msk.f32.gmra.mxu2 %vm781_vm2, %v3394_v57  ;;  %1330 = vmatpush.msrb.mxu3 %v1215_v61  ;;  %v3419_v28 = vpop.f32.mrf.mxu1  ;;  %4200 = vst [vmem:[#allocation18_spill] sm:$0xff] %v3421_v7 }
 0x17e   : > { %4199 = vst [vmem:[#allocation17_spill] sm:$0xff] %v3419_v28  ;;  %2707 = vtanh.f32 %v619_v8 }
 0x180   : > { %v931_v54 = vpop.f32.mrf.mxu2 }
 0x181   : > { %v932_v33 = vadd.f32 %v3224_v59, %v931_v54  ;;  %v622_v54 = vadd.f32 %v3041_v18, %v621_v25 }
 0x183   : > { %v3423_v50 = vpop.eup %2705  ;;  %v1003_v55 = vadd.f32 %v932_v33, %v3347_v13 }
 0x184   : > { %4201 = vst [vmem:[#allocation19_spill] sm:$0xff] %v3423_v50  ;;  %1109 = vrot.lane.b32.xlu2 %v3423_v50, %s2824_s29  ;;  %v3432_v35 = vpop.eup %2707 }
 0x185   : > { %2709 = vtanh.f32 %v1003_v55  ;;  %2538 = vmatmul.msk.f32.gmra.mxu2 %vm781_vm2, %v3421_v7  ;;  %4202 = vst [vmem:[#allocation20_spill] sm:$0xff] %v3432_v35  ;;  %v3437_v8 = vpop.f32.mrf.mxu1 }
 0x186   : > { %4204 = vst [vmem:[#allocation22_spill] sm:$0xff] %v3437_v8  ;;  %2711 = vtanh.f32 %v622_v54 }
 0x188   : > { %v934_v52 = vpop.f32.mrf.mxu2 }
 0x189   : > { %v935_v61 = vadd.f32 %v3224_v59, %v934_v52 }
 0x18b   : > { %v3434_v0 = vpop.eup %2709  ;;  %v1004_v33 = vadd.f32 %v935_v61, %v3362_v38 }
 0x18c   : > { %4203 = vst [vmem:[#allocation21_spill] sm:$0xff] %v3434_v0  ;;  %1848 = vrot.lane.b32.xlu2 %v3062_v27, %s2825_s30  ;;  %1111 = vrot.lane.b32.xlu0 %v3434_v0, %s2824_s29  ;;  %v3446_v25 = vpop.eup %2711 }
 0x18d   : > { %2713 = vtanh.f32 %v1004_v33  ;;  %2539 = vmatmul.msk.f32.gmra.mxu2 %vm781_vm2, %v3432_v35  ;;  %4205 = vst [vmem:[#allocation23_spill] sm:$0xff] %v3446_v25  ;;  %v3459_v54 = vpop.f32.mrf.mxu1 }
 0x190   : > { %v937_v18 = vpop.f32.mrf.mxu2 }
 0x191   : > { %v938_v55 = vadd.f32 %v3224_v59, %v937_v18 }
 0x193   : > { %v3448_v52 = vpop.eup %2713  ;;  %v1005_v61 = vadd.f32 %v938_v55, %v3377_v1 }
 0x194   : > { %4206 = vst [vmem:[#allocation24_spill] sm:$0xff] %v3448_v52  ;;  %1850 = vrot.lane.b32.xlu2 %v3074_v36, %s2825_s30  ;;  %1113 = vrot.lane.b32.xlu1 %v3448_v52, %s2824_s29 }
 0x195   : > { %2715 = vtanh.f32 %v1005_v61  ;;  %1854 = vrot.lane.b32.xlu0 %v3098_v32, %s2825_s30  ;;  %2540 = vmatmul.msk.f32.gmra.mxu2 %vm781_vm2, %v3446_v25  ;;  %v3466_v38 = vpop.f32.mrf.mxu1 }
 0x198   : > { %v940_v33 = vpop.f32.mrf.mxu2 }
 0x19b   : > { %v3461_v18 = vpop.eup %2715 }
 0x19c   : > { %4207 = vst [vmem:[#allocation25_spill] sm:$0xff] %v3461_v18  ;;  %1115 = vrot.lane.b32.xlu2 %v3461_v18, %s2824_s29 }
 0x19d   : > { %v3474_v18 = vpop.f32.mrf.mxu1 }
 0x19e   : > { %v1088_v55 = vpop.permute.xlu0 %1087  ;;  %4208 = vst [vmem:[#allocation26_spill] sm:$0xff] %v3474_v18 }
 0x19f   : > { %v1183_v1 = vmul.f32 %v3048_v9, %v1088_v55 }
 0x1a0   : > { %v943_v61 = vpop.f32.mrf.mxu2 }
 0x1a1   : > { %2541 = vmatmul.msk.f32.vlgmr.msrb.gmra.mxu3 %vm781_vm2, %v1183_v1 }
 0x1a4   : > { %1852 = vrot.lane.b32.xlu2 %v3086_v23, %s2825_s30 }
 0x1a6   : > { %v1090_v13 = vpop.permute.xlu0 %1089 }
 0x1a7   : > { %v1184_v52 = vmul.f32 %v3055_v21, %v1090_v13  ;;  %v3483_v13 = vpop.f32.mrf.mxu1 }
 0x1a8   : > { %v946_v0 = vpop.f32.mrf.mxu2 }
 0x1a9   : > { %v947_v50 = vadd.f32 %v3224_v59, %v946_v0  ;;  %2542 = vmatmul.msk.f32.gmra.mxu3 %vm781_vm2, %v1184_v52  ;;  %v1096_v0 = vpop.permute.xlu2 %1095 }
 0x1ab   : > { %v1008_v9 = vadd.f32 %v947_v50, %v3437_v8 }
 0x1ac   : > { %1856 = vrot.lane.b32.xlu2 %v3110_v41, %s2825_s30 }
 0x1ad   : > { %2717 = vtanh.f32 %v1008_v9 }
 0x1ae   : > { %v1092_v1 = vpop.permute.xlu1 %1091 }
 0x1af   : > { %v1185_v55 = vmul.f32 %v3062_v27, %v1092_v1  ;;  %v3489_v9 = vpop.f32.mrf.mxu1  ;;  %v1187_v1 = vmul.f32 %v3086_v23, %v1096_v0  ;;  %v944_v0 = vadd.f32 %v3224_v59, %v943_v61 }
 0x1b0   : > { %v949_v51 = vpop.f32.mrf.mxu2  ;;  %4210 = vst [vmem:[#allocation28_spill] sm:$0xff] %v3489_v9 }
 0x1b1   : > { %2543 = vmatmul.msk.f32.gmra.mxu3 %vm781_vm2, %v1185_v55  ;;  %v1098_v27 = vpop.permute.xlu2 %1097 }
 0x1b2   : > { %v1188_v2 = vmul.f32 %v3098_v32, %v1098_v27  ;;  %v941_v32 = vadd.f32 %v3224_v59, %v940_v33 }
 0x1b3   : > { %v3481_v21 = vpop.eup %2717 }
 0x1b4   : > { %4209 = vst [vmem:[#allocation27_spill] sm:$0xff] %v3481_v21  ;;  %1121 = vrot.lane.b32.xlu2 %v3481_v21, %s2824_s29 }
 0x1b6   : > { %v1094_v52 = vpop.permute.xlu1 %1093 }
 0x1b7   : > { %v1186_v50 = vmul.f32 %v3074_v36, %v1094_v52  ;;  %v3494_v56 = vpop.f32.mrf.mxu1 }
 0x1b8   : > { %v952_v8 = vpop.f32.mrf.mxu2 }
 0x1b9   : > { %2544 = vmatmul.msk.f32.gmra.mxu3 %vm781_vm2, %v1186_v50 }
 0x1bf   : > { %v3501_v23 = vpop.f32.mrf.mxu1 }
 0x1c0   : > { %v955_v55 = vpop.f32.mrf.mxu2  ;;  %4211 = vst [vmem:[#allocation29_spill] sm:$0xff] %v3501_v23 }
 0x1c1   : > { %2545 = vmatmul.msk.f32.gmra.mxu3 %vm781_vm2, %v1187_v1 }
 0x1c6   : > { %v1104_v16 = vpop.permute.xlu2 %1103 }
 0x1c7   : > { %v3513_v33 = vpop.f32.mrf.mxu1 }
 0x1c8   : > { %v958_v21 = vpop.f32.mrf.mxu2  ;;  %4212 = vst [vmem:[#allocation30_spill] sm:$0xff] %v3513_v33 }
 0x1c9   : > { %2546 = vmatmul.msk.f32.gmra.mxu3 %vm781_vm2, %v1188_v2  ;;  %v1006_v2 = vadd.f32 %v941_v32, %v3392_v6 }
 0x1cb   : > { %2719 = vtanh.f32 %v1006_v2 }
 0x1ce   : > { %v1845_v36 = vpop.permute.xlu2 %1844  ;;  %v1100_v52 = vpop.permute.xlu0 %1099 }
 0x1cf   : > { %v1940_v50 = vmul.f32 %v3241_v58, %v1845_v36  ;;  %v1189_v42 = vmul.f32 %v3110_v41, %v1100_v52  ;;  %v1007_v36 = vadd.f32 %v944_v0, %v3419_v28 }
 0x1d0   : > { %v961_v22 = vpop.f32.mrf.mxu2 }
 0x1d1   : > { %2547 = vmatmul.msk.f32.gmra.mxu3 %vm781_vm2, %v1189_v42  ;;  %2004 = vrot.lane.b32.xlu1 %v1940_v50, %s2826_s19  ;;  %2721 = vtanh.f32 %v1007_v36  ;;  %v1191_v50 = vmul.f32 %v3134_v15, %v1104_v16  ;;  %v3516_v32 = vpop.eup %2719  ;;  %v3528_v16 = vpop.f32.mrf.mxu1 }
 0x1d2   : > { %4213 = vst [vmem:[#allocation31_spill] sm:$0xff] %v3516_v32 }
 0x1d3   : > { %4214 = vst [vmem:[#allocation32_spill] sm:$0xff] %v3528_v16 }
 0x1d6   : > { %v1847_v27 = vpop.permute.xlu2 %1846  ;;  %v1102_v1 = vpop.permute.xlu1 %1101 }
 0x1d7   : > { %v1941_v41 = vmul.f32 %v3256_v26, %v1847_v27  ;;  %v1190_v52 = vmul.f32 %v3125_v5, %v1102_v1  ;;  %v3518_v27 = vpop.eup %2721  ;;  %v950_v1 = vadd.f32 %v3224_v59, %v949_v51 }
 0x1d8   : > { %v964_v42 = vpop.f32.mrf.mxu2 }
 0x1d9   : > { %2006 = vrot.lane.b32.xlu0 %v1941_v41, %s2826_s19  ;;  %2548 = vmatmul.msk.f32.gmra.mxu3 %vm781_vm2, %v1190_v52  ;;  %v1009_v2 = vadd.f32 %v950_v1, %v3459_v54  ;;  %v953_v1 = vadd.f32 %v3224_v59, %v952_v8  ;;  %v965_v8 = vadd.f32 %v3224_v59, %v964_v42 }
 0x1da   : > { %1858 = vrot.lane.b32.xlu1 %v3125_v5, %s2825_s30  ;;  %v956_v5 = vadd.f32 %v3224_v59, %v955_v55  ;;  %v962_v55 = vadd.f32 %v3224_v59, %v961_v22 }
 0x1db   : > { %2723 = vtanh.f32 %v1009_v2 }
 0x1dc   : > { %v1011_v36 = vadd.f32 %v956_v5, %v3474_v18 }
 0x1de   : > { %v1110_v61 = vpop.permute.xlu2 %1109  ;;  %2725 = vtanh.f32 %v1011_v36 }
 0x1e0   : > { %v967_v0 = vpop.f32.mrf.mxu2 }
 0x1e1   : > { %1117 = vrot.lane.b32.xlu0 %v3516_v32, %s2824_s29  ;;  %2549 = vmatmul.msk.f32.gmra.mxu3 %vm781_vm2, %v1191_v50  ;;  %v959_v50 = vadd.f32 %v3224_v59, %v958_v21  ;;  %v3542_v18 = vpop.eup %2723  ;;  %v1010_v21 = vadd.f32 %v953_v1, %v3466_v38 }
 0x1e2   : > { %1119 = vrot.lane.b32.xlu1 %v3518_v27, %s2824_s29 }
 0x1e3   : > { %v1012_v5 = vadd.f32 %v959_v50, %v3483_v13 }
 0x1e4   : > { %v3547_v36 = vpop.eup %2725 }
 0x1e5   : > { %2727 = vtanh.f32 %v1012_v5  ;;  %v1194_v5 = vmul.f32 %v3165_v37, %v1110_v61 }
 0x1e6   : > { %v1849_v41 = vpop.permute.xlu2 %1848  ;;  %v1106_v52 = vpop.permute.xlu0 %1105 }
 0x1e7   : > { %v1942_v51 = vmul.f32 %v3272_v14, %v1849_v41  ;;  %v1192_v28 = vmul.f32 %v3146_v20, %v1106_v52  ;;  %v1013_v41 = vadd.f32 %v962_v55, %v3489_v9  ;;  %v1014_v55 = vadd.f32 %v965_v8, %v3494_v56 }
 0x1e8   : > { %v970_v32 = vpop.f32.mrf.mxu2 }
 0x1e9   : > { %2008 = vrot.lane.b32.xlu2 %v1942_v51, %s2826_s19  ;;  %1860 = vrot.lane.b32.xlu0 %v3134_v15, %s2825_s30  ;;  %2729 = vtanh.f32 %v1013_v41  ;;  %v968_v41 = vadd.f32 %v3224_v59, %v967_v0  ;;  %v971_v8 = vadd.f32 %v3224_v59, %v970_v32 }
 0x1ea   : > { %2550 = vmatmul.msk.f32.gmra.mxu3 %vm781_vm2, %v1192_v28  ;;  %v3549_v28 = vpop.f32.mrf.mxu1  ;;  %2731 = vtanh.f32 %v1010_v21 }
 0x1eb   : > { %4215 = vst [vmem:[#allocation33_spill] sm:$0xff] %v3549_v28  ;;  %v3558_v50 = vpop.eup %2727  ;;  %2733 = vtanh.f32 %v1014_v55  ;;  %v1015_v61 = vadd.f32 %v968_v41, %v3501_v23  ;;  %v1016_v41 = vadd.f32 %v971_v8, %v3513_v33 }
 0x1ed   : > { %2735 = vtanh.f32 %v1015_v61 }
 0x1ee   : > { %v1851_v52 = vpop.permute.xlu2 %1850  ;;  %v1108_v2 = vpop.permute.xlu1 %1107 }
 0x1ef   : > { %v1943_v51 = vmul.f32 %v3288_v39, %v1851_v52  ;;  %v1193_v15 = vmul.f32 %v3158_v31, %v1108_v2  ;;  %v3561_v1 = vpop.eup %2729 }
 0x1f0   : > { %v973_v22 = vpop.f32.mrf.mxu2  ;;  %v3564_v2 = vpop.eup %2731 }
 0x1f1   : > { %1127 = vrot.lane.b32.xlu2 %v3547_v36, %s2824_s29  ;;  %1123 = vrot.lane.b32.xlu0 %v3542_v18, %s2824_s29 }
 0x1f2   : > { %2551 = vmatmul.msk.f32.gmra.mxu3 %vm781_vm2, %v1193_v15  ;;  %2010 = vrot.lane.b32.xlu1 %v1943_v51, %s2826_s19  ;;  %v3574_v42 = vpop.f32.mrf.mxu1  ;;  %v3578_v15 = vpop.eup %2733 }
 0x1f3   : > { %4216 = vst [vmem:[#allocation34_spill] sm:$0xff] %v3574_v42  ;;  %v3589_v23 = vpop.eup %2735 }
 0x1f4   : > { %4218 = vst [vmem:[#allocation36_spill] sm:$0xff] %v3589_v23 }
 0x1f6   : > { %v1116_v8 = vpop.permute.xlu2 %1115 }
 0x1f8   : > { %v976_v52 = vpop.f32.mrf.mxu2 }
 0x1f9   : > { %1131 = vrot.lane.b32.xlu2 %v3561_v1, %s2824_s29  ;;  %1129 = vrot.lane.b32.xlu0 %v3558_v50, %s2824_s29 }
 0x1fa   : > { %2552 = vmatmul.msk.f32.gmra.mxu3 %vm781_vm2, %v1194_v5  ;;  %1125 = vrot.lane.b32.xlu1 %v3564_v2, %s2824_s29  ;;  %v3586_v5 = vpop.f32.mrf.mxu1 }
 0x1fb   : > { %4217 = vst [vmem:[#allocation35_spill] sm:$0xff] %v3586_v5 }
 0x1fe   : > { %v1112_v21 = vpop.permute.xlu0 %1111 }
 0x1ff   : > { %v1195_v51 = vmul.f32 %v3172_v43, %v1112_v21 }
 0x200   : > { %v979_v0 = vpop.f32.mrf.mxu2 }
 0x201   : > { %v980_v9 = vadd.f32 %v3224_v59, %v979_v0  ;;  %v974_v0 = vadd.f32 %v3224_v59, %v973_v22 }
 0x202   : > { %2553 = vmatmul.msk.f32.gmra.mxu3 %vm781_vm2, %v1195_v51  ;;  %1133 = vrot.lane.b32.xlu1 %v3578_v15, %s2824_s29 }
 0x203   : > { %v1019_v55 = vadd.f32 %v980_v9, %v3574_v42  ;;  %v1017_v51 = vadd.f32 %v974_v0, %v3528_v16 }
 0x205   : > { %2737 = vtanh.f32 %v1019_v55  ;;  %v3601_v55 = vpop.f32.mrf.mxu1 }
 0x206   : > { %v1114_v21 = vpop.permute.xlu1 %1113  ;;  %2739 = vtanh.f32 %v1016_v41  ;;  %4220 = vst [vmem:[#allocation38_spill] sm:$0xff] %v3601_v55  ;;  %v1197_v41 = vmul.f32 %v3192_v49, %v1116_v8 }
 0x207   : > { %v1196_v61 = vmul.f32 %v3181_v45, %v1114_v21  ;;  %2741 = vtanh.f32 %v1017_v51 }
 0x208   : > { %v982_v32 = vpop.f32.mrf.mxu2 }
 0x20a   : > { %2554 = vmatmul.msk.f32.gmra.mxu3 %vm781_vm2, %v1196_v61  ;;  %1135 = vrot.lane.b32.xlu1 %v3589_v23, %s2824_s29  ;;  %v977_v61 = vadd.f32 %v3224_v59, %v976_v52  ;;  %v983_v52 = vadd.f32 %v3224_v59, %v982_v32 }
 0x20b   : > { %v3596_v9 = vpop.eup %2737 }
 0x20c   : > { %4219 = vst [vmem:[#allocation37_spill] sm:$0xff] %v3596_v9  ;;  %1143 = vrot.lane.b32.xlu2 %v3596_v9, %s2824_s29  ;;  %v3603_v21 = vpop.eup %2739  ;;  %v1018_v9 = vadd.f32 %v977_v61, %v3549_v28 }
 0x20d   : > { %4221 = vst [vmem:[#allocation39_spill] sm:$0xff] %v3603_v21  ;;  %v3613_v23 = vpop.eup %2741  ;;  %v3615_v8 = vpop.f32.mrf.mxu1 }
 0x20e   : > { %4222 = vst [vmem:[#allocation40_spill] sm:$0xff] %v3613_v23 }
 0x20f   : > { %4223 = vst [vmem:[#allocation41_spill] sm:$0xff] %v3615_v8 }
 0x210   : > { %v985_v22 = vpop.f32.mrf.mxu2 }
 0x211   : > { %v986_v42 = vadd.f32 %v3224_v59, %v985_v22  ;;  %v1020_v22 = vadd.f32 %v983_v52, %v3586_v5  ;;  %v1853_v52 = vpop.permute.xlu2 %1852 }
 0x212   : > { %2555 = vmatmul.msk.f32.gmra.mxu3 %vm781_vm2, %v1197_v41  ;;  %1137 = vrot.lane.b32.xlu1 %v3603_v21, %s2824_s29 }
 0x213   : > { %v1021_v0 = vadd.f32 %v986_v42, %v3601_v55 }
 0x215   : > { %2743 = vtanh.f32 %v1021_v0 }
 0x216   : > { %2745 = vtanh.f32 %v1018_v9  ;;  %v1855_v9 = vpop.permute.xlu0 %1854 }
 0x217   : > { %v1945_v32 = vmul.f32 %v3319_v17, %v1855_v9 }
 0x218   : > { %v988_v16 = vpop.f32.mrf.mxu2 }
 0x219   : > { %v989_v51 = vadd.f32 %v3224_v59, %v988_v16 }
 0x21a   : > { %1139 = vrot.lane.b32.xlu1 %v3613_v23, %s2824_s29 }
 0x21b   : > { %v3621_v41 = vpop.eup %2743  ;;  %v1022_v42 = vadd.f32 %v989_v51, %v3615_v8 }
 0x21c   : > { %4224 = vst [vmem:[#allocation42_spill] sm:$0xff] %v3621_v41  ;;  %1147 = vrot.lane.b32.xlu0 %v3621_v41, %s2824_s29  ;;  %v3627_v61 = vpop.eup %2745 }
 0x21d   : > { %2747 = vtanh.f32 %v1022_v42  ;;  %4225 = vst [vmem:[#allocation43_spill] sm:$0xff] %v3627_v61  ;;  %v1944_v42 = vmul.f32 %v3304_v47, %v1853_v52  ;;  %v1857_v52 = vpop.permute.xlu2 %1856 }
 0x21e   : > { %2749 = vtanh.f32 %v1020_v22 }
 0x222   : > { %1141 = vrot.lane.b32.xlu1 %v3627_v61, %s2824_s29 }
 0x223   : > { %v3632_v16 = vpop.eup %2747 }
 0x224   : > { %4226 = vst [vmem:[#allocation44_spill] sm:$0xff] %v3632_v16  ;;  %1149 = vrot.lane.b32.xlu2 %v3632_v16, %s2824_s29  ;;  %v1332_v0 = vpop.f32.mrf.mxu3  ;;  %2014 = vrot.lane.b32.xlu0 %v1945_v32, %s2826_s19  ;;  %v3637_v51 = vpop.eup %2749  ;;  %v1946_v16 = vmul.f32 %v3336_v62, %v1857_v52 }
 0x225   : > { %4227 = vst [vmem:[#allocation45_spill] sm:$0xff] %v3637_v51 }
 0x22a   : > { %1145 = vrot.lane.b32.xlu1 %v3637_v51, %s2824_s29 }
 0x22c   : > { %2012 = vrot.lane.b32.xlu2 %v1944_v42, %s2826_s19  ;;  %v1335_v22 = vpop.f32.mrf.mxu3  ;;  %1866 = vrot.lane.b32.xlu0 %v3165_v37, %s2825_s30 }
 0x232   : > { %1460 = vrot.lane.b32.xlu1 %v1332_v0, %s2826_s19 }
 0x234   : > { %1864 = vrot.lane.b32.xlu2 %v3158_v31, %s2825_s30  ;;  %v1338_v9 = vpop.f32.mrf.mxu3 }
 0x23a   : > { %1862 = vrot.lane.b32.xlu1 %v3146_v20, %s2825_s30 }
 0x23c   : > { %v1341_v32 = vpop.f32.mrf.mxu3 }
 0x242   : > { %2016 = vrot.lane.b32.xlu1 %v1946_v16, %s2826_s19 }
 0x243   : > { %v3652_v42 = vpop.permute.xlu1 %2004 }
 0x244   : > { %v1344_v41 = vpop.f32.mrf.mxu3 }
 0x24a   : > { %1868 = vrot.lane.b32.xlu1 %v3172_v43, %s2825_s30 }
 0x24b   : > { %v3656_v37 = vpop.permute.xlu0 %2006 }
 0x24c   : > { %v1859_v0 = vpop.permute.xlu1 %1858  ;;  %v1347_v31 = vpop.f32.mrf.mxu3 }
 0x24d   : > { %v1947_v51 = vmul.f32 %v3351_v12, %v1859_v0 }
 0x24f   : > { %2018 = vrot.lane.b32.xlu2 %v1947_v51, %s2826_s19  ;;  %v1122_v51 = vpop.permute.xlu2 %1121 }
 0x250   : > { %v1200_v0 = vmul.f32 %v3233_v3, %v1122_v51 }
 0x253   : > { %v1118_v20 = vpop.permute.xlu0 %1117 }
 0x254   : > { %v1198_v8 = vmul.f32 %v3202_v53, %v1118_v20  ;;  %v1350_v52 = vpop.f32.mrf.mxu3  ;;  %v1120_v16 = vpop.permute.xlu1 %1119 }
 0x255   : > { %v1199_v43 = vmul.f32 %v3217_v60, %v1120_v16 }
 0x256   : > { %2556 = vmatmul.msk.f32.gmra.mxu3 %vm781_vm2, %v1198_v8 }
 0x257   : > { %1870 = vrot.lane.b32.xlu2 %v3181_v45, %s2825_s30 }
 0x25b   : > { %v1861_v55 = vpop.permute.xlu0 %1860 }
 0x25c   : > { %v1948_v5 = vmul.f32 %v3366_v44, %v1861_v55  ;;  %v1353_v61 = vpop.f32.mrf.mxu3 }
 0x25e   : > { %2020 = vrot.lane.b32.xlu0 %v1948_v5, %s2826_s19  ;;  %2557 = vmatmul.msk.f32.gmra.mxu3 %vm781_vm2, %v1199_v43 }
 0x25f   : > { %1474 = vrot.lane.b32.xlu2 %v1353_v61, %s2826_s19  ;;  %v3678_v61 = vpop.permute.xlu2 %2008 }
 0x263   : > { %v1124_v45 = vpop.permute.xlu0 %1123 }
 0x264   : > { %v3670_v8 = vpop.permute.xlu1 %2010  ;;  %v1356_v20 = vpop.f32.mrf.mxu3  ;;  %v1201_v55 = vmul.f32 %v3246_v10, %v1124_v45 }
 0x265   : > { %1476 = vrot.lane.b32.xlu1 %v1356_v20, %s2826_s19 }
 0x266   : > { %1462 = vrot.lane.b32.xlu0 %v1335_v22, %s2826_s19  ;;  %2558 = vmatmul.msk.f32.gmra.mxu3 %vm781_vm2, %v1200_v0 }
 0x267   : > { %v1128_v22 = vpop.permute.xlu2 %1127 }
 0x268   : > { %v1203_v20 = vmul.f32 %v3277_v40, %v1128_v22 }
 0x26c   : > { %v1126_v5 = vpop.permute.xlu1 %1125 }
 0x26d   : > { %v1359_v16 = vpop.f32.mrf.mxu3  ;;  %v1202_v51 = vmul.f32 %v3261_v29, %v1126_v5 }
 0x26e   : > { %1464 = vrot.lane.b32.xlu0 %v1338_v9, %s2826_s19  ;;  %2559 = vmatmul.msk.f32.gmra.mxu3 %vm781_vm2, %v1201_v55  ;;  %v1130_v9 = vpop.permute.xlu0 %1129 }
 0x26f   : > { %v1204_v5 = vmul.f32 %v3293_v63, %v1130_v9 }
 0x274   : > { %v1134_v43 = vpop.permute.xlu1 %1133 }
 0x275   : > { %v1362_v23 = vpop.f32.mrf.mxu3 }
 0x276   : > { %1480 = vrot.lane.b32.xlu2 %v1362_v23, %s2826_s19  ;;  %1466 = vrot.lane.b32.xlu0 %v1341_v32, %s2826_s19  ;;  %v1132_v23 = vpop.permute.xlu2 %1131 }
 0x277   : > { %2560 = vmatmul.msk.f32.gmra.mxu3 %vm781_vm2, %v1202_v51  ;;  %v1205_v51 = vmul.f32 %v3309_v4, %v1132_v23 }
 0x27c   : > { %v1136_v0 = vpop.permute.xlu1 %1135 }
 0x27d   : > { %v1365_v45 = vpop.f32.mrf.mxu3 }
 0x27e   : > { %1468 = vrot.lane.b32.xlu0 %v1344_v41, %s2826_s19 }
 0x27f   : > { %2561 = vmatmul.msk.f32.gmra.mxu3 %vm781_vm2, %v1203_v20  ;;  %v1206_v20 = vmul.f32 %v3324_v34, %v1134_v43 }
 0x284   : > { %v1138_v55 = vpop.permute.xlu1 %1137 }
 0x285   : > { %v1368_v28 = vpop.f32.mrf.mxu3 }
 0x286   : > { %1484 = vrot.lane.b32.xlu1 %v1368_v28, %s2826_s19  ;;  %1470 = vrot.lane.b32.xlu0 %v1347_v31, %s2826_s19  ;;  %v1207_v31 = vmul.f32 %v3334_v46, %v1136_v0 }
 0x287   : > { %2562 = vmatmul.msk.f32.gmra.mxu3 %vm781_vm2, %v1204_v5  ;;  %v1208_v5 = vmul.f32 %v3349_v19, %v1138_v55 }
 0x28c   : > { %v1140_v32 = vpop.permute.xlu1 %1139 }
 0x28d   : > { %v1371_v22 = vpop.f32.mrf.mxu3 }
 0x28e   : > { %1486 = vrot.lane.b32.xlu2 %v1371_v22, %s2826_s19  ;;  %1472 = vrot.lane.b32.xlu0 %v1350_v52, %s2826_s19 }
 0x28f   : > { %2563 = vmatmul.msk.f32.gmra.mxu3 %vm781_vm2, %v1205_v51 }
 0x294   : > { %v1142_v41 = vpop.permute.xlu1 %1141 }
 0x295   : > { %v1374_v52 = vpop.f32.mrf.mxu3  ;;  %v1210_v55 = vmul.f32 %v3379_v11, %v1142_v41 }
 0x296   : > { %1478 = vrot.lane.b32.xlu0 %v1359_v16, %s2826_s19  ;;  %v1209_v16 = vmul.f32 %v3364_v30, %v1140_v32 }
 0x297   : > { %2564 = vmatmul.msk.f32.gmra.mxu3 %vm781_vm2, %v1206_v20 }
 0x29c   : > { %v1146_v28 = vpop.permute.xlu1 %1145 }
 0x29d   : > { %v1212_v20 = vmul.f32 %v3421_v7, %v1146_v28 }
 0x29e   : > { %1482 = vrot.lane.b32.xlu0 %v1365_v45, %s2826_s19  ;;  %v1148_v45 = vpop.permute.xlu0 %1147 }
 0x29f   : > { %2565 = vmatmul.msk.f32.gmra.mxu3 %vm781_vm2, %v1207_v31  ;;  %v1213_v31 = vmul.f32 %v3432_v35, %v1148_v45  ;;  %v4228_v45 = vld [vmem:[#allocation15_spill] sm:$0xff] }
 0x2a4   : > { %v1461_v9 = vpop.permute.xlu1 %1460 }
 0x2a5   : > { %v1556_v23 = vadd.f32 %v1461_v9, %v3179_v24  ;;  %v1144_v24 = vpop.permute.xlu2 %1143 }
 0x2a6   : > { %1488 = vrot.lane.b32.xlu0 %v1374_v52, %s2826_s19  ;;  %v1211_v51 = vmul.f32 %v3394_v57, %v1144_v24  ;;  %v3712_v22 = vpop.permute.xlu0 %2014 }
 0x2a7   : > { %v1588_v43 = vadd.f32 %v3224_v59, %v1556_v23  ;;  %2566 = vmatmul.msk.f32.gmra.mxu3 %vm781_vm2, %v1208_v5 }
 0x2a9   : > { %2751 = vtanh.f32 %v1588_v43 }
 0x2ad   : > { %v1150_v41 = vpop.permute.xlu2 %1149 }
 0x2ae   : > { %v1867_v32 = vpop.permute.xlu0 %1866  ;;  %v1214_v5 = vmul.f32 %v3446_v25, %v1150_v41 }
 0x2af   : > { %v2752_v0 = vpop.eup %2751  ;;  %2567 = vmatmul.msk.f32.gmra.mxu3 %vm781_vm2, %v1209_v16 }
 0x2b0   : > { %1716 = vrot.lane.b32.xlu1 %v2752_v0, %s2825_s30  ;;  %v1863_v0 = vpop.permute.xlu1 %1862 }
 0x2b5   : > { %v3726_v16 = vpop.permute.xlu2 %2012 }
 0x2b7   : > { %2568 = vmatmul.msk.f32.gmra.mxu3 %vm781_vm2, %v1210_v55  ;;  %v1949_v55 = vmul.f32 %v4228_v45, %v1863_v0 }
 0x2bf   : > { %2569 = vmatmul.msk.f32.gmra.mxu3 %vm781_vm2, %v1211_v51  ;;  %v4229_v51 = vld [vmem:[#allocation2_spill] sm:$0xff] }
 0x2c7   : > { %2570 = vmatmul.msk.f32.gmra.mxu3 %vm781_vm2, %v1212_v20 }
 0x2cf   : > { %2571 = vmatmul.msk.f32.gmra.mxu3 %vm781_vm2, %v1213_v31 }
 0x2d0   : > { %v3719_v9 = vpop.permute.xlu0 %2020 }
 0x2d7   : > { %2572 = vmatmul.msk.f32.gmra.mxu3 %vm781_vm2, %v1214_v5 }
 0x2d8   : > { %v1463_v52 = vpop.permute.xlu0 %1462 }
 0x2d9   : > { %v1557_v23 = vadd.f32 %v1463_v52, %v3190_v48  ;;  %v1377_v43 = vpop.f32.mrf.mxu3  ;;  %v1865_v48 = vpop.permute.xlu2 %1864 }
 0x2da   : > { %1490 = vrot.lane.b32.xlu1 %v1377_v43, %s2826_s19 }
 0x2db   : > { %v1589_v28 = vadd.f32 %v3224_v59, %v1557_v23  ;;  %v4230_v23 = vld [vmem:[#allocation3_spill] sm:$0xff] }
 0x2dd   : > { %2753 = vtanh.f32 %v1589_v28 }
 0x2e0   : > { %v1465_v24 = vpop.permute.xlu0 %1464 }
 0x2e1   : > { %v1558_v20 = vadd.f32 %v1465_v24, %v4229_v51  ;;  %v1380_v52 = vpop.f32.mrf.mxu3  ;;  %v3738_v0 = vpop.permute.xlu2 %2018  ;;  %v4231_v24 = vld [vmem:[#allocation4_spill] sm:$0xff] }
 0x2e2   : > { %2022 = vrot.lane.b32.xlu1 %v1949_v55, %s2826_s19 }
 0x2e3   : > { %v2754_v31 = vpop.eup %2753  ;;  %v1590_v41 = vadd.f32 %v3224_v59, %v1558_v20 }
 0x2e4   : > { %1718 = vrot.lane.b32.xlu0 %v2754_v31, %s2825_s30  ;;  %v3744_v31 = vld [vmem:[%s4120_s5] ss:$0 sm:$0xff] }
 0x2e5   : > { %2755 = vtanh.f32 %v1590_v41 }
 0x2e8   : > { %v1467_v5 = vpop.permute.xlu0 %1466 }
 0x2e9   : > { %v1559_v43 = vadd.f32 %v1467_v5, %v4230_v23  ;;  %v1383_v20 = vpop.f32.mrf.mxu3  ;;  %v3750_v5 = vpop.permute.xlu1 %2016  ;;  %v4232_v23 = vld [vmem:[#allocation5_spill] sm:$0xff] }
 0x2eb   : > { %v2756_v25 = vpop.eup %2755  ;;  %v1591_v28 = vadd.f32 %v3224_v59, %v1559_v43 }
 0x2ec   : > { %1872 = vrot.lane.b32.xlu0 %v3192_v49, %s2825_s30  ;;  %1720 = vrot.lane.b32.xlu2 %v2756_v25, %s2825_s30  ;;  %v1871_v49 = vpop.permute.xlu2 %1870 }
 0x2ed   : > { %2757 = vtanh.f32 %v1591_v28  ;;  %v4233_v28 = vld [vmem:[#allocation16_spill] sm:$0xff] }
 0x2f0   : > { %v1469_v55 = vpop.permute.xlu0 %1468 }
 0x2f1   : > { %v1560_v51 = vadd.f32 %v1469_v55, %v4231_v24  ;;  %v1950_v55 = vmul.f32 %v4233_v28, %v1865_v48  ;;  %v2134_v48 = vld [vmem:[%s4122_s7 + $0x10] sm:$0xff] }
 0x2f3   : > { %v1592_v41 = vadd.f32 %v3744_v31, %v1560_v51  ;;  %v2758_v59 = vpop.eup %2757 }
 0x2f4   : > { %1492 = vrot.lane.b32.xlu2 %v1380_v52, %s2826_s19  ;;  %1494 = vrot.lane.b32.xlu0 %v1383_v20, %s2826_s19  ;;  %v2135_v52 = vld [vmem:[%s4122_s7 + $0x18] sm:$0xff]  ;;  %v4234_v20 = vld [vmem:[#allocation6_spill] sm:$0xff] }
 0x2f5   : > { %2759 = vtanh.f32 %v1592_v41  ;;  %1722 = vrot.lane.b32.xlu1 %v2758_v59, %s2825_s30  ;;  %2244 = vmatpush.msrb.mxu0 %v2135_v52  ;;  %v4235_v59 = vld [vmem:[#allocation19_spill] sm:$0xff] }
 0x2f7   : > { %2245 = vmatpush.msrb.mxu0 %v2134_v48 }
 0x2f8   : > { %v1471_v25 = vpop.permute.xlu0 %1470 }
 0x2f9   : > { %v1561_v43 = vadd.f32 %v1471_v25, %v4232_v23  ;;  %v1951_v25 = vmul.f32 %v4235_v59, %v1867_v32  ;;  %v1475_v23 = vpop.permute.xlu2 %1474  ;;  %v2132_v32 = vld [vmem:[%s4122_s7] sm:$0xff] }
 0x2fb   : > { %v2760_v24 = vpop.eup %2759  ;;  %v1593_v35 = vadd.f32 %v3744_v31, %v1561_v43  ;;  %v1869_v43 = vpop.permute.xlu1 %1868 }
 0x2fc   : > { %2024 = vrot.lane.b32.xlu2 %v1950_v55, %s2826_s19  ;;  %1724 = vrot.lane.b32.xlu0 %v2760_v24, %s2825_s30  ;;  %v2133_v55 = vld [vmem:[%s4122_s7 + $0x8] sm:$0xff] }
 0x2fd   : > { %1874 = vrot.lane.b32.xlu1 %v3202_v53, %s2825_s30  ;;  %2761 = vtanh.f32 %v1593_v35  ;;  %v4236_v24 = vld [vmem:[#allocation7_spill] sm:$0xff]  ;;  %2246 = vmatpush.msrb.mxu0 %v2133_v55 }
 0x2fe   : > { %v1563_v52 = vadd.f32 %v1475_v23, %v4236_v24  ;;  %v4238_v24 = vld [vmem:[#allocation21_spill] sm:$0xff] }
 0x2ff   : > { %2247 = vmatpush.msrb.mxu0 %v2132_v32  ;;  %v1952_v32 = vmul.f32 %v4238_v24, %v1869_v43  ;;  %v1652_v43 = vsub.f32 1.0, %v3241_v58  ;;  %v4242_v58 = vld [vmem:[#allocation12_spill] sm:$0xff] }
 0x300   : > { %v1473_v51 = vpop.permute.xlu0 %1472 }
 0x301   : > { %v1562_v41 = vadd.f32 %v1473_v51, %v4234_v20  ;;  %v1386_v51 = vpop.f32.mrf.mxu3  ;;  %v1595_v20 = vadd.f32 %v3744_v31, %v1563_v52  ;;  %v4239_v52 = vld [vmem:[#allocation9_spill] sm:$0xff] }
 0x303   : > { %v1594_v53 = vadd.f32 %v3744_v31, %v1562_v41  ;;  %v2762_v35 = vpop.eup %2761  ;;  %v1477_v48 = vpop.permute.xlu1 %1476 }
 0x304   : > { %1876 = vrot.lane.b32.xlu2 %v3217_v60, %s2825_s30  ;;  %2026 = vrot.lane.b32.xlu0 %v1951_v25, %s2826_s19  ;;  %v4237_v60 = vld [vmem:[#allocation8_spill] sm:$0xff] }
 0x305   : > { %2763 = vtanh.f32 %v1594_v53  ;;  %1726 = vrot.lane.b32.xlu1 %v2762_v35, %s2825_s30  ;;  %v1564_v25 = vadd.f32 %v1477_v48, %v4237_v60 }
 0x306   : > { %2765 = vtanh.f32 %v1595_v20 }
 0x307   : > { %v1596_v53 = vadd.f32 %v3744_v31, %v1564_v25 }
 0x308   : > { %v1479_v55 = vpop.permute.xlu0 %1478 }
 0x309   : > { %v1389_v23 = vpop.f32.mrf.mxu3  ;;  %2767 = vtanh.f32 %v1596_v53 }
 0x30b   : > { %v2764_v41 = vpop.eup %2763  ;;  %v1485_v48 = vpop.permute.xlu1 %1484 }
 0x30c   : > { %1728 = vrot.lane.b32.xlu2 %v2764_v41, %s2825_s30  ;;  %1878 = vrot.lane.b32.xlu0 %v3233_v3, %s2825_s30  ;;  %v2766_v35 = vpop.eup %2765  ;;  %v1565_v41 = vadd.f32 %v1479_v55, %v4239_v52 }
 0x30d   : > { %1496 = vrot.lane.b32.xlu1 %v1386_v51, %s2826_s19  ;;  %v4240_v51 = vld [vmem:[#allocation24_spill] sm:$0xff] }
 0x30e   : > { %v1597_v3 = vadd.f32 %v3744_v31, %v1565_v41  ;;  %v1953_v20 = vmul.f32 %v4240_v51, %v1871_v49 }
 0x30f   : > { %v2768_v25 = vpop.eup %2767 }
 0x310   : > { %2769 = vtanh.f32 %v1597_v3 }
 0x311   : > { %v1392_v60 = vpop.f32.mrf.mxu3 }
 0x314   : > { %1730 = vrot.lane.b32.xlu0 %v2766_v35, %s2825_s30  ;;  %1498 = vrot.lane.b32.xlu2 %v1389_v23, %s2826_s19  ;;  %v1483_v35 = vpop.permute.xlu0 %1482 }
 0x315   : > { %2028 = vrot.lane.b32.xlu1 %v1952_v32, %s2826_s19  ;;  %v4241_v32 = vld [vmem:[#allocation11_spill] sm:$0xff] }
 0x316   : > { %v2770_v55 = vpop.eup %2769  ;;  %v1567_v52 = vadd.f32 %v1483_v35, %v4241_v32 }
 0x318   : > { %v1599_v3 = vadd.f32 %v3744_v31, %v1567_v52 }
 0x319   : > { %v1395_v41 = vpop.f32.mrf.mxu3 }
 0x31a   : > { %2771 = vtanh.f32 %v1599_v3  ;;  %v4243_v3 = vld [vmem:[#allocation10_spill] sm:$0xff] }
 0x31c   : > { %2030 = vrot.lane.b32.xlu2 %v1953_v20, %s2826_s19  ;;  %1500 = vrot.lane.b32.xlu0 %v1392_v60, %s2826_s19  ;;  %v1568_v20 = vadd.f32 %v1485_v48, %v4242_v58 }
 0x31d   : > { %1732 = vrot.lane.b32.xlu1 %v2768_v25, %s2825_s30 }
 0x320   : > { %v2772_v25 = vpop.eup %2771 }
 0x321   : > { %v1398_v60 = vpop.f32.mrf.mxu3 }
 0x322   : > { %v1717_v23 = vpop.permute.xlu1 %1716 }
 0x323   : > { %v1812_v53 = vmul.f32 %v1717_v23, %v1652_v43 }
 0x324   : > { %1734 = vrot.lane.b32.xlu2 %v2770_v55, %s2825_s30  ;;  %v1489_v55 = vpop.permute.xlu0 %1488 }
 0x325   : > { %v2100_v49 = vadd.f32 %v3652_v42, %v1812_v53  ;;  %1880 = vrot.lane.b32.xlu1 %v3246_v10, %s2825_s30  ;;  %v1600_v42 = vadd.f32 %v3744_v31, %v1568_v20  ;;  %v1481_v10 = vpop.permute.xlu2 %1480  ;;  %v1653_v53 = vsub.f32 1.0, %v3256_v26  ;;  %v1654_v20 = vsub.f32 1.0, %v3272_v14  ;;  %v4244_v26 = vld [vmem:[#allocation25_spill] sm:$0xff] }
 0x326   : > { %v1566_v58 = vadd.f32 %v1481_v10, %v4243_v3 }
 0x327   : > { %2573 = vmatmul.msk.f32.vlgmr.msrb.gmra.mxu0 %vm781_vm2, %v2100_v49  ;;  %2773 = vtanh.f32 %v1600_v42 }
 0x32c   : > { %1882 = vrot.lane.b32.xlu2 %v3261_v29, %s2825_s30 }
 0x32d   : > { %1502 = vrot.lane.b32.xlu1 %v1395_v41, %s2826_s19  ;;  %v2774_v43 = vpop.eup %2773  ;;  %v1487_v23 = vpop.permute.xlu2 %1486 }
 0x334   : > { %1504 = vrot.lane.b32.xlu2 %v1398_v60, %s2826_s19  ;;  %v1598_v60 = vadd.f32 %v3744_v31, %v1566_v58 }
 0x335   : > { %1738 = vrot.lane.b32.xlu1 %v2772_v25, %s2825_s30 }
 0x336   : > { %2775 = vtanh.f32 %v1598_v60  ;;  %v4245_v60 = vld [vmem:[#allocation31_spill] sm:$0xff] }
 0x33c   : > { %1740 = vrot.lane.b32.xlu2 %v2774_v43, %s2825_s30  ;;  %v2776_v3 = vpop.eup %2775 }
 0x346   : > { %v1721_v29 = vpop.permute.xlu2 %1720 }
 0x347   : > { %v1814_v42 = vmul.f32 %v1721_v29, %v1654_v20 }
 0x34c   : > { %v1491_v35 = vpop.permute.xlu1 %1490 }
 0x34d   : > { %v1571_v14 = vadd.f32 %v1491_v35, %v3392_v6 }
 0x34e   : > { %v3812_v48 = vpop.permute.xlu2 %1492 }
 0x34f   : > { %v1603_v10 = vadd.f32 %v3744_v31, %v1571_v14 }
 0x351   : > { %2777 = vtanh.f32 %v1603_v10 }
 0x354   : > { %v3822_v7 = vpop.permute.xlu1 %2022 }
 0x356   : > { %v1719_v49 = vpop.permute.xlu0 %1718  ;;  %v3815_v32 = vpop.permute.xlu2 %2024 }
 0x357   : > { %v1813_v52 = vmul.f32 %v1719_v49, %v1653_v53  ;;  %v2102_v53 = vadd.f32 %v3678_v61, %v1814_v42  ;;  %v2778_v42 = vpop.eup %2777 }
 0x359   : > { %v2101_v41 = vadd.f32 %v3656_v37, %v1813_v52  ;;  %v1401_v37 = vpop.f32.mrf.mxu3  ;;  %v1655_v52 = vsub.f32 1.0, %v3288_v39 }
 0x35b   : > { %2574 = vmatmul.msk.f32.gmra.mxu0 %vm781_vm2, %v2101_v41 }
 0x35e   : > { %v1873_v25 = vpop.permute.xlu0 %1872  ;;  %v1877_v43 = vpop.permute.xlu2 %1876 }
 0x35f   : > { %v1954_v21 = vmul.f32 %v4244_v26, %v1873_v25  ;;  %v1956_v33 = vmul.f32 %v3518_v27, %v1877_v43 }
 0x361   : > { %2032 = vrot.lane.b32.xlu0 %v1954_v21, %s2826_s19  ;;  %2036 = vrot.lane.b32.xlu2 %v1956_v33, %s2826_s19  ;;  %v1404_v33 = vpop.f32.mrf.mxu3  ;;  %v1656_v21 = vsub.f32 1.0, %v3304_v47  ;;  %v4247_v47 = vld [vmem:[#allocation14_spill] sm:$0xff] }
 0x363   : > { %2575 = vmatmul.msk.f32.gmra.mxu0 %vm781_vm2, %v2102_v53  ;;  %v1570_v53 = vadd.f32 %v1489_v55, %v4247_v47  ;;  %v1658_v55 = vsub.f32 1.0, %v3336_v62 }
 0x366   : > { %v1729_v29 = vpop.permute.xlu2 %1728  ;;  %v3832_v49 = vpop.permute.xlu0 %1494 }
 0x367   : > { %v1723_v41 = vpop.permute.xlu1 %1722 }
 0x368   : > { %v1815_v61 = vmul.f32 %v1723_v41, %v1655_v52 }
 0x369   : > { %1736 = vrot.lane.b32.xlu0 %v2776_v3, %s2825_s30  ;;  %1888 = vrot.lane.b32.xlu2 %v3309_v4, %s2825_s30  ;;  %v4246_v4 = vld [vmem:[#allocation13_spill] sm:$0xff]  ;;  %v1407_v3 = vpop.f32.mrf.mxu3 }
 0x36a   : > { %v2103_v6 = vadd.f32 %v3670_v8, %v1815_v61  ;;  %v1569_v8 = vadd.f32 %v1487_v23, %v4246_v4 }
 0x36c   : > { %2576 = vmatmul.msk.f32.gmra.mxu0 %vm781_vm2, %v2103_v6  ;;  %v1601_v14 = vadd.f32 %v3744_v31, %v1569_v8 }
 0x36e   : > { %v1725_v35 = vpop.permute.xlu0 %1724  ;;  %v3841_v58 = vpop.permute.xlu2 %1498  ;;  %2779 = vtanh.f32 %v1601_v14 }
 0x36f   : > { %v1816_v39 = vmul.f32 %v1725_v35, %v1656_v21  ;;  %v1875_v20 = vpop.permute.xlu1 %1874 }
 0x370   : > { %v1955_v25 = vmul.f32 %v4245_v60, %v1875_v20 }
 0x371   : > { %v2104_v43 = vadd.f32 %v3726_v16, %v1816_v39  ;;  %1884 = vrot.lane.b32.xlu0 %v3277_v40, %s2825_s30  ;;  %1746 = vrot.lane.b32.xlu2 %v2778_v42, %s2825_s30  ;;  %v1657_v16 = vsub.f32 1.0, %v3319_v17  ;;  %v1602_v40 = vadd.f32 %v3744_v31, %v1570_v53  ;;  %v1818_v17 = vmul.f32 %v1729_v29, %v1658_v55  ;;  %v1410_v53 = vpop.f32.mrf.mxu3 }
 0x372   : > { %2034 = vrot.lane.b32.xlu1 %v1955_v25, %s2826_s19  ;;  %v4248_v25 = vld [vmem:[#allocation27_spill] sm:$0xff] }
 0x373   : > { %2781 = vtanh.f32 %v1602_v40 }
 0x374   : > { %2577 = vmatmul.msk.f32.gmra.mxu0 %vm781_vm2, %v2104_v43  ;;  %v2780_v39 = vpop.eup %2779 }
 0x376   : > { %v3853_v10 = vpop.permute.xlu0 %2026  ;;  %v3855_v52 = vpop.permute.xlu2 %2030 }
 0x377   : > { %v1727_v41 = vpop.permute.xlu1 %1726 }
 0x378   : > { %v1817_v61 = vmul.f32 %v1727_v41, %v1657_v16  ;;  %v1660_v16 = vsub.f32 1.0, %v3366_v44 }
 0x379   : > { %1506 = vrot.lane.b32.xlu0 %v1401_v37, %s2826_s19  ;;  %1510 = vrot.lane.b32.xlu2 %v1407_v3, %s2826_s19  ;;  %v2782_v20 = vpop.eup %2781  ;;  %v2106_v37 = vadd.f32 %v3750_v5, %v1818_v17  ;;  %v4250_v3 = vld [vmem:[#allocation22_spill] sm:$0xff] }
 0x37a   : > { %v2105_v23 = vadd.f32 %v3712_v22, %v1817_v61  ;;  %1886 = vrot.lane.b32.xlu1 %v3293_v63, %s2825_s30  ;;  %v1659_v63 = vsub.f32 1.0, %v3351_v12  ;;  %v1661_v61 = vsub.f32 1.0, %v4228_v45 }
 0x37c   : > { %2578 = vmatmul.msk.f32.gmra.mxu0 %vm781_vm2, %v2105_v23  ;;  %v1413_v23 = vpop.f32.mrf.mxu3 }
 0x37e   : > { %v1879_v6 = vpop.permute.xlu0 %1878  ;;  %v1735_v21 = vpop.permute.xlu2 %1734 }
 0x37f   : > { %v1497_v35 = vpop.permute.xlu1 %1496  ;;  %v1957_v43 = vmul.f32 %v4248_v25, %v1879_v6  ;;  %v1821_v44 = vmul.f32 %v1735_v21, %v1661_v61 }
 0x380   : > { %v1574_v22 = vadd.f32 %v1497_v35, %v3459_v54  ;;  %v4249_v54 = vld [vmem:[#allocation17_spill] sm:$0xff] }
 0x381   : > { %1742 = vrot.lane.b32.xlu0 %v2780_v39, %s2825_s30  ;;  %v1572_v12 = vadd.f32 %v3812_v48, %v4249_v54 }
 0x382   : > { %1744 = vrot.lane.b32.xlu1 %v2782_v20, %s2825_s30  ;;  %v1606_v62 = vadd.f32 %v3744_v31, %v1574_v22 }
 0x383   : > { %v1604_v14 = vadd.f32 %v3744_v31, %v1572_v12 }
 0x384   : > { %2579 = vmatmul.msk.f32.gmra.mxu0 %vm781_vm2, %v2106_v37  ;;  %2783 = vtanh.f32 %v1606_v62  ;;  %v4251_v37 = vld [vmem:[#allocation26_spill] sm:$0xff] }
 0x385   : > { %2785 = vtanh.f32 %v1604_v14 }
 0x386   : > { %v1731_v29 = vpop.permute.xlu0 %1730  ;;  %v1883_v42 = vpop.permute.xlu2 %1882 }
 0x387   : > { %v1819_v4 = vmul.f32 %v1731_v29, %v1659_v63  ;;  %v1959_v8 = vmul.f32 %v3564_v2, %v1883_v42  ;;  %v3875_v47 = vpop.permute.xlu1 %2028 }
 0x389   : > { %v2107_v5 = vadd.f32 %v3738_v0, %v1819_v4  ;;  %2038 = vrot.lane.b32.xlu0 %v1957_v43, %s2826_s19  ;;  %2042 = vrot.lane.b32.xlu2 %v1959_v8, %s2826_s19 }
 0x38a   : > { %1508 = vrot.lane.b32.xlu1 %v1404_v33, %s2826_s19  ;;  %v2784_v41 = vpop.eup %2783  ;;  %v1573_v33 = vadd.f32 %v3832_v49, %v4250_v3  ;;  %v1416_v49 = vpop.f32.mrf.mxu3 }
 0x38b   : > { %v2786_v6 = vpop.eup %2785 }
 0x38c   : > { %2580 = vmatmul.msk.f32.gmra.mxu0 %vm781_vm2, %v2107_v5  ;;  %v1605_v55 = vadd.f32 %v3744_v31, %v1573_v33  ;;  %v1662_v5 = vsub.f32 1.0, %v4233_v28 }
 0x38e   : > { %2787 = vtanh.f32 %v1605_v55 }
 0x38f   : > { %v1733_v40 = vpop.permute.xlu1 %1732 }
 0x390   : > { %v1820_v0 = vmul.f32 %v1733_v40, %v1660_v16  ;;  %v1575_v16 = vadd.f32 %v3841_v58, %v3466_v38  ;;  %v1663_v40 = vsub.f32 1.0, %v4235_v59  ;;  %v1664_v59 = vsub.f32 1.0, %v4238_v24 }
 0x391   : > { %1890 = vrot.lane.b32.xlu0 %v3324_v34, %s2825_s30  ;;  %1752 = vrot.lane.b32.xlu2 %v2784_v41, %s2825_s30 }
 0x392   : > { %v2108_v48 = vadd.f32 %v3719_v9, %v1820_v0  ;;  %v2109_v9 = vadd.f32 %v3822_v7, %v1821_v44  ;;  %v1607_v0 = vadd.f32 %v3744_v31, %v1575_v16 }
 0x394   : > { %2581 = vmatmul.msk.f32.gmra.mxu0 %vm781_vm2, %v2108_v48  ;;  %v2788_v35 = vpop.eup %2787 }
 0x397   : > { %v1881_v17 = vpop.permute.xlu1 %1880 }
 0x398   : > { %v1958_v34 = vmul.f32 %v3542_v18, %v1881_v17 }
 0x399   : > { %1748 = vrot.lane.b32.xlu0 %v2786_v6, %s2825_s30  ;;  %1894 = vrot.lane.b32.xlu2 %v3349_v19, %s2825_s30  ;;  %v1501_v19 = vpop.permute.xlu0 %1500 }
 0x39a   : > { %2040 = vrot.lane.b32.xlu1 %v1958_v34, %s2826_s19  ;;  %v1576_v22 = vadd.f32 %v1501_v19, %v4251_v37  ;;  %v1665_v34 = vsub.f32 1.0, %v4240_v51  ;;  %v4253_v37 = vld [vmem:[#allocation29_spill] sm:$0xff] }
 0x39c   : > { %2582 = vmatmul.msk.f32.gmra.mxu0 %vm781_vm2, %v2109_v9  ;;  %v1608_v63 = vadd.f32 %v3744_v31, %v1576_v22 }
 0x39f   : > { %v1503_v45 = vpop.permute.xlu1 %1502 }
 0x3a0   : > { %v1577_v21 = vadd.f32 %v1503_v45, %v3483_v13  ;;  %v1505_v13 = vpop.permute.xlu2 %1504 }
 0x3a1   : > { %1512 = vrot.lane.b32.xlu0 %v1410_v53, %s2826_s19  ;;  %1516 = vrot.lane.b32.xlu2 %v1416_v49, %s2826_s19 }
 0x3a2   : > { %v1609_v39 = vadd.f32 %v3744_v31, %v1577_v21  ;;  %1750 = vrot.lane.b32.xlu1 %v2788_v35, %s2825_s30 }
 0x3a4   : > { %2789 = vtanh.f32 %v1609_v39  ;;  %v2249_v7 = vpop.f32.mrf.mxu0  ;;  %v1666_v39 = vsub.f32 1.0, %v4244_v26 }
 0x3a5   : > { %2346 = vst.msk [vmem:[%s3912_s14] sm:$0xff] %vm2345_vm3, %v2249_v7  ;;  %2791 = vtanh.f32 %v1608_v63 }
 0x3a6   : > { %2793 = vtanh.f32 %v1607_v0 }
 0x3a7   : > { %v1739_v12 = vpop.permute.xlu1 %1738 }
 0x3a8   : > { %v1741_v62 = vpop.permute.xlu2 %1740 }
 0x3a9   : > { %v1824_v33 = vmul.f32 %v1741_v62, %v1664_v59 }
 0x3aa   : > { %v2790_v20 = vpop.eup %2789  ;;  %1892 = vrot.lane.b32.xlu1 %v3334_v46, %s2825_s30 }
 0x3ab   : > { %1758 = vrot.lane.b32.xlu2 %v2790_v20, %s2825_s30  ;;  %v2792_v29 = vpop.eup %2791 }
 0x3ac   : > { %v2794_v44 = vpop.eup %2793 }
 0x3b2   : > { %1514 = vrot.lane.b32.xlu1 %v1413_v23, %s2826_s19 }
 0x3ba   : > { %1756 = vrot.lane.b32.xlu1 %v2792_v29, %s2825_s30  ;;  %v1667_v29 = vsub.f32 1.0, %v4245_v60  ;;  %v1668_v60 = vsub.f32 1.0, %v3518_v27 }
 0x3bb   : > { %v3923_v42 = vpop.permute.xlu2 %2036 }
 0x3c3   : > { %v1889_v43 = vpop.permute.xlu2 %1888 }
 0x3c4   : > { %v1962_v46 = vmul.f32 %v3561_v1, %v1889_v43 }
 0x3c6   : > { %2048 = vrot.lane.b32.xlu2 %v1962_v46, %s2826_s19 }
 0x3cb   : > { %v1747_v38 = vpop.permute.xlu2 %1746 }
 0x3ce   : > { %1900 = vrot.lane.b32.xlu2 %v3394_v57, %s2825_s30  ;;  %v1823_v57 = vmul.f32 %v1739_v12, %v1663_v40 }
 0x3d3   : > { %v2033_v4 = vpop.permute.xlu0 %2032  ;;  %v1511_v17 = vpop.permute.xlu2 %1510 }
 0x3d8   : > { %v2252_v8 = vpop.f32.mrf.mxu0 }
 0x3d9   : > { %2347 = vst.msk [vmem:[%s3912_s14 + $0x8] sm:$0xff] %vm2345_vm3, %v2252_v8  ;;  %v1827_v8 = vmul.f32 %v1747_v38, %v1667_v29  ;;  %v1669_v38 = vsub.f32 1.0, %v4248_v25  ;;  %v1670_v25 = vsub.f32 1.0, %v3542_v18  ;;  %v1671_v29 = vsub.f32 1.0, %v3564_v2  ;;  %v4264_v2 = vld [vmem:[#allocation40_spill] sm:$0xff] }
 0x3db   : > { %v1737_v54 = vpop.permute.xlu0 %1736 }
 0x3dc   : > { %v1822_v53 = vmul.f32 %v1737_v54, %v1662_v5 }
 0x3de   : > { %v2110_v14 = vadd.f32 %v3815_v32, %v1822_v53  ;;  %v2111_v32 = vadd.f32 %v3853_v10, %v1823_v57  ;;  %v2112_v10 = vadd.f32 %v3875_v47, %v1824_v33  ;;  %v4255_v33 = vld [vmem:[#allocation39_spill] sm:$0xff] }
 0x3e0   : > { %v2255_v41 = vpop.f32.mrf.mxu0  ;;  %2583 = vmatmul.msk.f32.gmra.mxu0 %vm781_vm2, %v2110_v14 }
 0x3e1   : > { %2348 = vst.msk [vmem:[%s3912_s14 + $0x10] sm:$0xff] %vm2345_vm3, %v2255_v41 }
 0x3e3   : > { %v1885_v28 = vpop.permute.xlu0 %1884  ;;  %v3965_v51 = vpop.permute.xlu2 %2042 }
 0x3e4   : > { %v1960_v48 = vmul.f32 %v3547_v36, %v1885_v28  ;;  %v2035_v3 = vpop.permute.xlu1 %2034 }
 0x3e5   : > { %v2115_v54 = vadd.f32 %v2035_v3, %v1827_v8 }
 0x3e6   : > { %2044 = vrot.lane.b32.xlu0 %v1960_v48, %s2826_s19  ;;  %v4254_v48 = vld [vmem:[#allocation30_spill] sm:$0xff] }
 0x3e7   : > { %v1581_v3 = vadd.f32 %v1511_v17, %v4254_v48 }
 0x3e8   : > { %2584 = vmatmul.msk.f32.gmra.mxu0 %vm781_vm2, %v2111_v32 }
 0x3e9   : > { %v2258_v58 = vpop.f32.mrf.mxu0  ;;  %v1613_v27 = vadd.f32 %v3744_v31, %v1581_v3 }
 0x3ea   : > { %2349 = vst.msk [vmem:[%s3912_s14 + $0x18] sm:$0xff] %vm2345_vm3, %v2258_v58 }
 0x3eb   : > { %v1507_v61 = vpop.permute.xlu0 %1506  ;;  %v1753_v43 = vpop.permute.xlu2 %1752 }
 0x3ec   : > { %v1887_v23 = vpop.permute.xlu1 %1886  ;;  %v1579_v24 = vadd.f32 %v1507_v61, %v3494_v56  ;;  %v4252_v56 = vld [vmem:[#allocation28_spill] sm:$0xff] }
 0x3ed   : > { %v1961_v55 = vmul.f32 %v3558_v50, %v1887_v23  ;;  %v1578_v35 = vadd.f32 %v1505_v13, %v4252_v56  ;;  %v4256_v23 = vld [vmem:[#allocation18_spill] sm:$0xff] }
 0x3ee   : > { %1754 = vrot.lane.b32.xlu0 %v2794_v44, %s2825_s30  ;;  %v1611_v45 = vadd.f32 %v3744_v31, %v1579_v24 }
 0x3ef   : > { %2046 = vrot.lane.b32.xlu1 %v1961_v55, %s2826_s19  ;;  %v4257_v55 = vld [vmem:[#allocation32_spill] sm:$0xff] }
 0x3f0   : > { %2585 = vmatmul.msk.f32.gmra.mxu0 %vm781_vm2, %v2112_v10  ;;  %2795 = vtanh.f32 %v1611_v45  ;;  %v1830_v45 = vmul.f32 %v1753_v43, %v1670_v25 }
 0x3f1   : > { %v2261_v6 = vpop.f32.mrf.mxu0 }
 0x3f2   : > { %2350 = vst.msk [vmem:[%s3912_s14 + $0x20] sm:$0xff] %vm2345_vm3, %v2261_v6 }
 0x3f3   : > { %v1743_v9 = vpop.permute.xlu0 %1742  ;;  %v1895_v57 = vpop.permute.xlu2 %1894 }
 0x3f4   : > { %v1825_v49 = vmul.f32 %v1743_v9, %v1665_v34  ;;  %v1745_v47 = vpop.permute.xlu1 %1744  ;;  %v1965_v61 = vmul.f32 %v4255_v33, %v1895_v57  ;;  %v4265_v57 = vld [vmem:[#allocation43_spill] sm:$0xff] }
 0x3f5   : > { %v1826_v19 = vmul.f32 %v1745_v47, %v1666_v39 }
 0x3f6   : > { %v2113_v21 = vadd.f32 %v3855_v52, %v1825_v49  ;;  %1896 = vrot.lane.b32.xlu0 %v3364_v30, %s2825_s30  ;;  %v1419_v52 = vpop.f32.mrf.mxu3  ;;  %v1610_v30 = vadd.f32 %v3744_v31, %v1578_v35  ;;  %v4258_v49 = vld [vmem:[#allocation36_spill] sm:$0xff] }
 0x3f7   : > { %1898 = vrot.lane.b32.xlu1 %v3379_v11, %s2825_s30  ;;  %v2796_v11 = vpop.eup %2795  ;;  %v2114_v63 = vadd.f32 %v2033_v4, %v1826_v19 }
 0x3f8   : > { %2586 = vmatmul.msk.f32.gmra.mxu0 %vm781_vm2, %v2113_v21  ;;  %2797 = vtanh.f32 %v1610_v30 }
 0x3f9   : > { %v2264_v7 = vpop.f32.mrf.mxu0 }
 0x3fa   : > { %2351 = vst.msk [vmem:[%s3912_s14 + $0x28] sm:$0xff] %vm2345_vm3, %v2264_v7  ;;  %v4259_v7 = vld [vmem:[#allocation33_spill] sm:$0xff] }
 0x3fb   : > { %v2039_v20 = vpop.permute.xlu0 %2038  ;;  %v1517_v44 = vpop.permute.xlu2 %1516 }
 0x3fc   : > { %v1509_v13 = vpop.permute.xlu1 %1508 }
 0x3fd   : > { %v1580_v22 = vadd.f32 %v1509_v13, %v4253_v37  ;;  %v4261_v13 = vld [vmem:[#allocation23_spill] sm:$0xff] }
 0x3fe   : > { %1518 = vrot.lane.b32.xlu0 %v1419_v52, %s2826_s19  ;;  %v2798_v4 = vpop.eup %2797  ;;  %v1422_v5 = vpop.f32.mrf.mxu3  ;;  %v4260_v52 = vld [vmem:[#allocation20_spill] sm:$0xff] }
 0x3ff   : > { %v1612_v26 = vadd.f32 %v3744_v31, %v1580_v22  ;;  %1762 = vrot.lane.b32.xlu1 %v2796_v11, %s2825_s30  ;;  %v4262_v22 = vld [vmem:[#allocation37_spill] sm:$0xff] }
 0x400   : > { %2587 = vmatmul.msk.f32.gmra.mxu0 %vm781_vm2, %v2114_v63 }
 0x401   : > { %2799 = vtanh.f32 %v1612_v26  ;;  %v2267_v62 = vpop.f32.mrf.mxu0 }
 0x402   : > { %2352 = vst.msk [vmem:[%s3912_s14 + $0x30] sm:$0xff] %vm2345_vm3, %v2267_v62  ;;  %2801 = vtanh.f32 %v1613_v27 }
 0x403   : > { %v1891_v46 = vpop.permute.xlu0 %1890 }
 0x404   : > { %v1963_v16 = vmul.f32 %v3578_v15, %v1891_v46 }
 0x405   : > { %v1759_v56 = vpop.permute.xlu2 %1758 }
 0x406   : > { %1760 = vrot.lane.b32.xlu0 %v2798_v4, %s2825_s30  ;;  %v1425_v28 = vpop.f32.mrf.mxu3 }
 0x407   : > { %v2800_v12 = vpop.eup %2799  ;;  %1520 = vrot.lane.b32.xlu1 %v1422_v5, %s2826_s19  ;;  %v4263_v5 = vld [vmem:[#allocation34_spill] sm:$0xff] }
 0x408   : > { %1764 = vrot.lane.b32.xlu2 %v2800_v12, %s2825_s30  ;;  %2588 = vmatmul.msk.f32.gmra.mxu0 %vm781_vm2, %v2115_v54  ;;  %v2802_v9 = vpop.eup %2801  ;;  %v1584_v54 = vadd.f32 %v1517_v44, %v4263_v5 }
 0x409   : > { %v2270_v53 = vpop.f32.mrf.mxu0 }
 0x40a   : > { %2353 = vst.msk [vmem:[%s3912_s14 + $0x38] sm:$0xff] %vm2345_vm3, %v2270_v53  ;;  %v1672_v53 = vsub.f32 1.0, %v3547_v36  ;;  %v1673_v36 = vsub.f32 1.0, %v3558_v50  ;;  %v1674_v50 = vsub.f32 1.0, %v3561_v1  ;;  %v1675_v1 = vsub.f32 1.0, %v3578_v15 }
 0x40b   : > { %v1749_v14 = vpop.permute.xlu0 %1748 }
 0x40c   : > { %v1828_v40 = vmul.f32 %v1749_v14, %v1668_v60  ;;  %v2041_v41 = vpop.permute.xlu1 %2040  ;;  %v1616_v60 = vadd.f32 %v3744_v31, %v1584_v54  ;;  %v1833_v3 = vmul.f32 %v1759_v56, %v1673_v36 }
 0x40d   : > { %v2118_v21 = vadd.f32 %v2041_v41, %v1830_v45 }
 0x40e   : > { %v2116_v0 = vadd.f32 %v3923_v42, %v1828_v40  ;;  %2050 = vrot.lane.b32.xlu0 %v1963_v16, %s2826_s19 }
 0x410   : > { %1522 = vrot.lane.b32.xlu2 %v1425_v28, %s2826_s19  ;;  %2589 = vmatmul.msk.f32.gmra.mxu0 %vm781_vm2, %v2116_v0 }
 0x411   : > { %v2273_v32 = vpop.f32.mrf.mxu0 }
 0x412   : > { %2354 = vst.msk [vmem:[%s3912_s14 + $0x40] sm:$0xff] %vm2345_vm3, %v2273_v32  ;;  %v4266_v32 = vld [vmem:[#allocation35_spill] sm:$0xff] }
 0x413   : > { %v1513_v59 = vpop.permute.xlu0 %1512 }
 0x414   : > { %v1751_v58 = vpop.permute.xlu1 %1750  ;;  %v1582_v10 = vadd.f32 %v1513_v59, %v4257_v55 }
 0x415   : > { %v1829_v42 = vmul.f32 %v1751_v58, %v1669_v38 }
 0x416   : > { %1902 = vrot.lane.b32.xlu0 %v4256_v23, %s2825_s30  ;;  %v1614_v6 = vadd.f32 %v3744_v31, %v1582_v10 }
 0x417   : > { %v2117_v24 = vadd.f32 %v2039_v20, %v1829_v42 }
 0x418   : > { %2054 = vrot.lane.b32.xlu2 %v1965_v61, %s2826_s19  ;;  %2803 = vtanh.f32 %v1614_v6 }
 0x419   : > { %v2276_v17 = vpop.f32.mrf.mxu0  ;;  %2590 = vmatmul.msk.f32.gmra.mxu0 %vm781_vm2, %v2117_v24  ;;  %v4267_v24 = vld [vmem:[#allocation38_spill] sm:$0xff] }
 0x41a   : > { %2355 = vst.msk [vmem:[%s3912_s14 + $0x48] sm:$0xff] %vm2345_vm3, %v2276_v17 }
 0x41c   : > { %v1893_v34 = vpop.permute.xlu1 %1892 }
 0x41d   : > { %v1964_v47 = vmul.f32 %v4258_v49, %v1893_v34 }
 0x41e   : > { %1766 = vrot.lane.b32.xlu0 %v2802_v9, %s2825_s30  ;;  %v2804_v39 = vpop.eup %2803 }
 0x41f   : > { %2052 = vrot.lane.b32.xlu1 %v1964_v47, %s2826_s19 }
 0x420   : > { %v2049_v30 = vpop.permute.xlu2 %2048 }
 0x421   : > { %2591 = vmatmul.msk.f32.gmra.mxu0 %vm781_vm2, %v2118_v21 }
 0x424   : > { %v1515_v35 = vpop.permute.xlu1 %1514 }
 0x425   : > { %v1583_v18 = vadd.f32 %v1515_v35, %v4259_v7 }
 0x426   : > { %1768 = vrot.lane.b32.xlu0 %v2804_v39, %s2825_s30  ;;  %v4268_v39 = vld [vmem:[#allocation41_spill] sm:$0xff] }
 0x427   : > { %v1615_v19 = vadd.f32 %v3744_v31, %v1583_v18  ;;  %1904 = vrot.lane.b32.xlu1 %v4260_v52, %s2825_s30 }
 0x428   : > { %v1901_v37 = vpop.permute.xlu2 %1900 }
 0x429   : > { %2805 = vtanh.f32 %v1615_v19  ;;  %v1968_v11 = vmul.f32 %v4262_v22, %v1901_v37 }
 0x42a   : > { %2807 = vtanh.f32 %v1616_v60 }
 0x42c   : > { %v1757_v26 = vpop.permute.xlu1 %1756 }
 0x42d   : > { %v1832_v16 = vmul.f32 %v1757_v26, %v1672_v53 }
 0x42f   : > { %v2806_v20 = vpop.eup %2805  ;;  %1906 = vrot.lane.b32.xlu1 %v4261_v13, %s2825_s30  ;;  %v1676_v13 = vsub.f32 1.0, %v4258_v49 }
 0x430   : > { %1770 = vrot.lane.b32.xlu0 %v2806_v20, %s2825_s30  ;;  %v2808_v59 = vpop.eup %2807 }
 0x438   : > { %2060 = vrot.lane.b32.xlu0 %v1968_v11, %s2826_s19 }
 0x458   : > { %v2045_v63 = vpop.permute.xlu0 %2044 }
 0x45d   : > { %v2279_v62 = vpop.f32.mrf.mxu0 }
 0x45e   : > { %2356 = vst.msk [vmem:[%s3912_s14 + $0x50] sm:$0xff] %vm2345_vm3, %v2279_v62 }
 0x460   : > { %v1755_v43 = vpop.permute.xlu0 %1754 }
 0x461   : > { %v1831_v46 = vmul.f32 %v1755_v43, %v1671_v29  ;;  %v2047_v8 = vpop.permute.xlu1 %2046 }
 0x462   : > { %v2121_v58 = vadd.f32 %v2047_v8, %v1833_v3  ;;  %v1765_v23 = vpop.permute.xlu2 %1764 }
 0x463   : > { %v2119_v4 = vadd.f32 %v3965_v51, %v1831_v46  ;;  %v2120_v51 = vadd.f32 %v2045_v63, %v1832_v16  ;;  %v1836_v37 = vmul.f32 %v1765_v23, %v1676_v13 }
 0x465   : > { %v2282_v12 = vpop.f32.mrf.mxu0  ;;  %2592 = vmatmul.msk.f32.gmra.mxu0 %vm781_vm2, %v2119_v4  ;;  %v4270_v4 = vld [vmem:[#allocation42_spill] sm:$0xff] }
 0x466   : > { %2357 = vst.msk [vmem:[%s3912_s14 + $0x58] sm:$0xff] %vm2345_vm3, %v2282_v12 }
 0x468   : > { %v1897_v14 = vpop.permute.xlu0 %1896 }
 0x469   : > { %v1966_v40 = vmul.f32 %v4264_v2, %v1897_v14  ;;  %v1899_v41 = vpop.permute.xlu1 %1898  ;;  %v1678_v14 = vsub.f32 1.0, %v4264_v2 }
 0x46a   : > { %v1967_v0 = vmul.f32 %v4265_v57, %v1899_v41  ;;  %v1523_v47 = vpop.permute.xlu2 %1522 }
 0x46b   : > { %2056 = vrot.lane.b32.xlu2 %v1966_v40, %s2826_s19  ;;  %v1587_v7 = vadd.f32 %v1523_v47, %v4268_v39 }
 0x46c   : > { %2058 = vrot.lane.b32.xlu1 %v1967_v0, %s2826_s19 }
 0x46d   : > { %v2285_v28 = vpop.f32.mrf.mxu0  ;;  %2593 = vmatmul.msk.f32.gmra.mxu0 %vm781_vm2, %v2120_v51  ;;  %v1619_v19 = vadd.f32 %v3744_v31, %v1587_v7  ;;  %v1679_v51 = vsub.f32 1.0, %v4265_v57 }
 0x46e   : > { %2358 = vst.msk [vmem:[%s3912_s14 + $0x60] sm:$0xff] %vm2345_vm3, %v2285_v28 }
 0x470   : > { %v1519_v48 = vpop.permute.xlu0 %1518 }
 0x471   : > { %v1585_v27 = vadd.f32 %v1519_v48, %v4266_v32  ;;  %v1763_v38 = vpop.permute.xlu1 %1762  ;;  %v1680_v32 = vsub.f32 1.0, %v4262_v22 }
 0x472   : > { %v1835_v21 = vmul.f32 %v1763_v38, %v1675_v1  ;;  %v2055_v46 = vpop.permute.xlu2 %2054 }
 0x473   : > { %v1617_v42 = vadd.f32 %v3744_v31, %v1585_v27  ;;  %1772 = vrot.lane.b32.xlu2 %v2808_v59, %s2825_s30 }
 0x475   : > { %2809 = vtanh.f32 %v1617_v42  ;;  %v2288_v61 = vpop.f32.mrf.mxu0  ;;  %2594 = vmatmul.msk.f32.gmra.mxu0 %vm781_vm2, %v2121_v58 }
 0x476   : > { %2359 = vst.msk [vmem:[%s3912_s14 + $0x68] sm:$0xff] %vm2345_vm3, %v2288_v61 }
 0x478   : > { %v1761_v44 = vpop.permute.xlu0 %1760 }
 0x479   : > { %v1834_v55 = vmul.f32 %v1761_v44, %v1674_v50  ;;  %v1521_v10 = vpop.permute.xlu1 %1520 }
 0x47a   : > { %v1586_v17 = vadd.f32 %v1521_v10, %v4267_v24  ;;  %v1682_v24 = vsub.f32 1.0, %v4270_v4 }
 0x47b   : > { %v2810_v25 = vpop.eup %2809  ;;  %v2122_v6 = vadd.f32 %v2049_v30, %v1834_v55  ;;  %v4269_v30 = vld [vmem:[#allocation45_spill] sm:$0xff] }
 0x47c   : > { %v1618_v34 = vadd.f32 %v3744_v31, %v1586_v17  ;;  %1774 = vrot.lane.b32.xlu1 %v2810_v25, %s2825_s30  ;;  %v1677_v31 = vsub.f32 1.0, %v4255_v33  ;;  %v4271_v33 = vld [vmem:[#allocation44_spill] sm:$0xff]  ;;  %v1681_v58 = vsub.f32 1.0, %v4269_v30 }
 0x47d   : > { %v2291_v9 = vpop.f32.mrf.mxu0  ;;  %2595 = vmatmul.msk.f32.gmra.mxu0 %vm781_vm2, %v2122_v6  ;;  %v1683_v1 = vsub.f32 1.0, %v4271_v33 }
 0x47e   : > { %2811 = vtanh.f32 %v1618_v34  ;;  %2360 = vst.msk [vmem:[%s3912_s14 + $0x70] sm:$0xff] %vm2345_vm3, %v2291_v9 }
 0x47f   : > { %2813 = vtanh.f32 %v1619_v19 }
 0x480   : > { %v2051_v45 = vpop.permute.xlu0 %2050 }
 0x481   : > { %v2123_v56 = vadd.f32 %v2051_v45, %v1835_v21 }
 0x484   : > { %v2812_v35 = vpop.eup %2811 }
 0x485   : > { %1776 = vrot.lane.b32.xlu0 %v2812_v35, %s2825_s30  ;;  %v2294_v18 = vpop.f32.mrf.mxu0  ;;  %2596 = vmatmul.msk.f32.gmra.mxu0 %vm781_vm2, %v2123_v56  ;;  %v2814_v63 = vpop.eup %2813 }
 0x486   : > { %2361 = vst.msk [vmem:[%s3912_s14 + $0x78] sm:$0xff] %vm2345_vm3, %v2294_v18 }
 0x488   : > { %v1903_v52 = vpop.permute.xlu0 %1902 }
 0x489   : > { %v1969_v15 = vmul.f32 %v4269_v30, %v1903_v52 }
 0x48b   : > { %2062 = vrot.lane.b32.xlu2 %v1969_v15, %s2826_s19 }
 0x48d   : > { %v2297_v20 = vpop.f32.mrf.mxu0 }
 0x48e   : > { %2362 = vst.msk [vmem:[%s3912_s14 + $0x80] sm:$0xff] %vm2345_vm3, %v2297_v20 }
 0x490   : > { %v1767_v62 = vpop.permute.xlu0 %1766 }
 0x491   : > { %v2053_v11 = vpop.permute.xlu1 %2052  ;;  %v1837_v29 = vmul.f32 %v1767_v62, %v1677_v31 }
 0x492   : > { %v2124_v26 = vadd.f32 %v2053_v11, %v1836_v37 }
 0x493   : > { %1778 = vrot.lane.b32.xlu2 %v2814_v63, %s2825_s30  ;;  %v2125_v8 = vadd.f32 %v2055_v46, %v1837_v29 }
 0x494   : > { %2597 = vmatmul.msk.f32.gmra.mxu0 %vm781_vm2, %v2124_v26 }
 0x496   : > { %v2300_v43 = vpop.f32.mrf.mxu0 }
 0x497   : > { %2363 = vst.msk [vmem:[%s3912_s14 + $0x88] sm:$0xff] %vm2345_vm3, %v2300_v43 }
 0x498   : > { %v1769_v60 = vpop.permute.xlu0 %1768 }
 0x499   : > { %v1905_v49 = vpop.permute.xlu1 %1904  ;;  %v1838_v16 = vmul.f32 %v1769_v60, %v1678_v14 }
 0x49a   : > { %v1970_v5 = vmul.f32 %v4270_v4, %v1905_v49 }
 0x49c   : > { %2064 = vrot.lane.b32.xlu1 %v1970_v5, %s2826_s19  ;;  %2598 = vmatmul.msk.f32.gmra.mxu0 %vm781_vm2, %v2125_v8 }
 0x49e   : > { %v2303_v54 = vpop.f32.mrf.mxu0 }
 0x49f   : > { %2364 = vst.msk [vmem:[%s3912_s14 + $0x90] sm:$0xff] %vm2345_vm3, %v2303_v54 }
 0x4a1   : > { %v1907_v12 = vpop.permute.xlu1 %1906 }
 0x4a2   : > { %v1971_v53 = vmul.f32 %v4271_v33, %v1907_v12  ;;  %v1771_v0 = vpop.permute.xlu0 %1770 }
 0x4a3   : > { %v1839_v28 = vmul.f32 %v1771_v0, %v1679_v51 }
 0x4a4   : > { %2066 = vrot.lane.b32.xlu0 %v1971_v53, %s2826_s19 }
 0x4aa   : > { %v2061_v38 = vpop.permute.xlu0 %2060 }
 0x4c5   : > { %v2057_v40 = vpop.permute.xlu2 %2056 }
 0x4c6   : > { %v2126_v41 = vadd.f32 %v2057_v40, %v1838_v16 }
 0x4c8   : > { %2599 = vmatmul.msk.f32.gmra.mxu0 %vm781_vm2, %v2126_v41 }
 0x4cd   : > { %v1773_v3 = vpop.permute.xlu2 %1772 }
 0x4ce   : > { %v1840_v2 = vmul.f32 %v1773_v3, %v1680_v32 }
 0x4d0   : > { %v2128_v59 = vadd.f32 %v2061_v38, %v1840_v2 }
 0x4de   : > { %v2059_v36 = vpop.permute.xlu1 %2058 }
 0x4df   : > { %v2127_v48 = vadd.f32 %v2059_v36, %v1839_v28 }
 0x4e1   : > { %2600 = vmatmul.msk.f32.gmra.mxu0 %vm781_vm2, %v2127_v48 }
 0x4e2   : > { %v2306_v27 = vpop.f32.mrf.mxu0 }
 0x4e3   : > { %2365 = vst.msk [vmem:[%s3912_s14 + $0x98] sm:$0xff] %vm2345_vm3, %v2306_v27 }
 0x4e5   : > { %v2063_v61 = vpop.permute.xlu2 %2062 }
 0x4e9   : > { %2601 = vmatmul.msk.f32.gmra.mxu0 %vm781_vm2, %v2128_v59 }
 0x4ea   : > { %v2309_v57 = vpop.f32.mrf.mxu0 }
 0x4eb   : > { %2366 = vst.msk [vmem:[%s3912_s14 + $0xa0] sm:$0xff] %vm2345_vm3, %v2309_v57 }
 0x4ed   : > { %v1779_v9 = vpop.permute.xlu2 %1778 }
 0x4ee   : > { %v1775_v42 = vpop.permute.xlu1 %1774  ;;  %v1843_v45 = vmul.f32 %v1779_v9, %v1683_v1 }
 0x4ef   : > { %v1841_v22 = vmul.f32 %v1775_v42, %v1681_v58 }
 0x4f1   : > { %v2129_v23 = vadd.f32 %v2063_v61, %v1841_v22 }
 0x4f2   : > { %v2312_v50 = vpop.f32.mrf.mxu0 }
 0x4f3   : > { %2367 = vst.msk [vmem:[%s3912_s14 + $0xa8] sm:$0xff] %vm2345_vm3, %v2312_v50  ;;  %2602 = vmatmul.msk.f32.gmra.mxu0 %vm781_vm2, %v2129_v23 }
 0x4f7   : > { %v1777_v10 = vpop.permute.xlu0 %1776 }
 0x4f8   : > { %v1842_v17 = vmul.f32 %v1777_v10, %v1682_v24 }
 0x4fa   : > { %v2315_v44 = vpop.f32.mrf.mxu0 }
 0x4fb   : > { %2368 = vst.msk [vmem:[%s3912_s14 + $0xb0] sm:$0xff] %vm2345_vm3, %v2315_v44 }
 0x502   : > { %v2318_v55 = vpop.f32.mrf.mxu0 }
 0x503   : > { %2369 = vst.msk [vmem:[%s3912_s14 + $0xb8] sm:$0xff] %vm2345_vm3, %v2318_v55 }
 0x50e   : > { %v2065_v25 = vpop.permute.xlu1 %2064 }
 0x50f   : > { %v2130_v6 = vadd.f32 %v2065_v25, %v1842_v17 }
 0x511   : > { %v2321_v34 = vpop.f32.mrf.mxu0  ;;  %2603 = vmatmul.msk.f32.gmra.mxu0 %vm781_vm2, %v2130_v6 }
 0x512   : > { %2370 = vst.msk [vmem:[%s3912_s14 + $0xc0] sm:$0xff] %vm2345_vm3, %v2321_v34 }
 0x516   : > { %v2067_v47 = vpop.permute.xlu0 %2066 }
 0x517   : > { %v2131_v21 = vadd.f32 %v2067_v47, %v1843_v45 }
 0x519   : > { %v2324_v56 = vpop.f32.mrf.mxu0  ;;  %2604 = vmatmul.msk.f32.gmra.mxu0 %vm781_vm2, %v2131_v21 }
 0x51a   : > { %2371 = vst.msk [vmem:[%s3912_s14 + $0xc8] sm:$0xff] %vm2345_vm3, %v2324_v56 }
 0x545   : > { %v2327_v35 = vpop.f32.mrf.mxu0 }
 0x546   : > { %2372 = vst.msk [vmem:[%s3912_s14 + $0xd0] sm:$0xff] %vm2345_vm3, %v2327_v35 }
 0x55e   : > { %v2330_v39 = vpop.f32.mrf.mxu0 }
 0x55f   : > { %2373 = vst.msk [vmem:[%s3912_s14 + $0xd8] sm:$0xff] %vm2345_vm3, %v2330_v39 }
 0x566   : > { %v2333_v7 = vpop.f32.mrf.mxu0 }
 0x567   : > { %2374 = vst.msk [vmem:[%s3912_s14 + $0xe0] sm:$0xff] %vm2345_vm3, %v2333_v7 }
 0x570   : > { %v2336_v18 = vpop.f32.mrf.mxu0 }
 0x571   : > { %2375 = vst.msk [vmem:[%s3912_s14 + $0xe8] sm:$0xff] %vm2345_vm3, %v2336_v18 }
 0x58e   : > { %v2339_v19 = vpop.f32.mrf.mxu0 }
 0x58f   : > { %2376 = vst.msk [vmem:[%s3912_s14 + $0xf0] sm:$0xff] %vm2345_vm3, %v2339_v19 }
 0x596   : > { %v2342_v52 = vpop.f32.mrf.mxu0 }
 0x597   : > { %2377 = vst.msk [vmem:[%s3912_s14 + $0xf8] sm:$0xff] %vm2345_vm3, %v2342_v52 }
 0x598 PF: > { %s18_s27 = sadd.s32 1, %s2822_s27  }
 0x599   : > { %p15_p4 = scmp.ge.s32.totalorder %s18_s27, 4  }
 0x59b   :  { %17 = sbr.rel (!%p15_p4) target bundleno = 1 (0x1), region = 82 }

</bundles_post_ra>
